<compile_context>
chip_gen: v6e
topology: v6e:2x2x1
jax: 0.10.0
libtpu: 0.0.40
codegen_flags: <defaults>
</compile_context>

<pallas_src>
import jax
import jax.numpy as jnp
from jax.experimental import pallas as pl
from jax.experimental.pallas import tpu as pltpu


# --------------------------------------------------------------------------
# Kernel
# --------------------------------------------------------------------------
def _attn_projector_kernel(x_ref, wqkv_ref, bqkv_ref, wp_ref, bp_ref, o_ref):
    tb, L, D = x_ref.shape
    O_pad = o_ref.shape[-1]

    # bf16 operands feed the MXU; f32 accumulation via preferred_element_type.
    x = x_ref[...].astype(jnp.bfloat16)                       # (tb, L, D)

    # Fused QKV projection: one (tb*L, D) @ (D, 3D) matmul.  Merging the two
    # leading dims keeps the lane (D) axis intact, so the reshape is
    # layout-free (L is a multiple of 8 here).
    xb = x.reshape(tb * L, D)
    qkv = jnp.dot(xb, wqkv_ref[...], preferred_element_type=jnp.float32)
    qkv = qkv + bqkv_ref[...].astype(jnp.float32)              # (tb*L, 3D) f32
    qkv = qkv.reshape(tb, L, 3 * D)
    q = qkv[:, :, 0 * D:1 * D]         # 1/sqrt(D) already folded into wq / bq
    k = qkv[:, :, 1 * D:2 * D]
    v = qkv[:, :, 2 * D:3 * D]

    # scores[b,l,m] = sum_d q[b,l,d] k[b,m,d]; bf16 operands, f32 accumulate.
    # TODO(synk): for tiny L/D (sub-128) a VPU broadcast-multiply+sum path would
    # avoid under-occupied MXU passes; and audit whether Mosaic inserts an XLU
    # transpose of k here (if so, emit k pre-transposed from the QKV matmul).
    scores = jnp.einsum('bld,bmd->blm',
                        q.astype(jnp.bfloat16), k.astype(jnp.bfloat16),
                        preferred_element_type=jnp.float32)     # (tb, L, L)

    # Softmax over the last axis (PyTorch Softmax(dim=2)), f32, max-stabilized.
    m = jnp.max(scores, axis=-1, keepdims=True)
    e = jnp.exp(scores - m)
    denom = jnp.sum(e, axis=-1, keepdims=True)
    # approx reciprocal runs on the EUP slot; ~1e-3 rel error on the softmax
    # normalization (fine for inference; use approx=False for tight-accuracy).
    attn = e * pl.reciprocal(denom, approx=True)

    weighted = jnp.einsum('blm,bmd->bld',
                          attn.astype(jnp.bfloat16), v.astype(jnp.bfloat16),
                          preferred_element_type=jnp.float32)   # (tb, L, D) f32

    # Projector WITHOUT the (tb, L*D) sublane->lane flatten: unrolled f32
    # accumulation of L small (tb, D) @ (D, O_pad) matmuls, wp kept as
    # (L, D, O_pad) so every operand stays lane-aligned on D / O_pad.
    wb = weighted.astype(jnp.bfloat16)
    acc = jnp.zeros((tb, O_pad), jnp.float32)
    for l in range(L):                                          # static unroll
        acc = acc + jnp.dot(wb[:, l, :], wp_ref[l],
                            preferred_element_type=jnp.float32)
    out = acc + bp_ref[...].astype(jnp.float32)
    o_ref[...] = out.astype(o_ref.dtype)


# --------------------------------------------------------------------------
# Sizing helpers
# --------------------------------------------------------------------------
def _device_kind():
    try:
        return jax.devices()[0].device_kind.lower()
    except Exception:
        return ""


def _vmem_capacity_bytes():
    try:
        return int(pltpu.get_tpu_info().vmem_capacity_bytes)
    except Exception:
        return 64 << 20          # conservative (v7x has 64 MiB per TC)


def _footprint_bytes(tb, L, D, O_pad):
    """Rough per-step VMEM footprint (double-buffered tiles + resident weights
    + f32 intermediates)."""
    bf16, f32 = 2, 4
    x_tile = 2 * tb * L * D * f32                 # double-buffered input tile
    out_tile = 2 * tb * O_pad * f32               # double-buffered output tile
    weights = ((D * 3 * D) * bf16 + (3 * D) * f32
               + (L * D * O_pad) * bf16 + O_pad * f32)
    inter = (tb * L * 3 * D + 2 * tb * L * L + tb * L * D + tb * O_pad) * f32
    return x_tile + out_tile + 2 * weights + inter   # weights x2 if dbl-buffered


def _pick_batch_block(B, L, D, O_pad, *, target_rows, vmem_budget, num_tc):
    divisors = [t for t in range(1, B + 1) if B % t == 0]
    # (8,128) rule on the (tb, O_pad) output block: tb must be a multiple of 8
    # unless it spans the whole batch.
    aligned = [t for t in divisors if t == B or t % 8 == 0]
    if aligned:
        divisors = aligned
    fitting = [t for t in divisors if _footprint_bytes(t, L, D, O_pad) <= vmem_budget]
    if not fitting:
        fitting = [min(divisors)]
    # Smallest tile that already fills the MXU M-dim; else biggest that fits.
    reach = [t for t in fitting if t * L >= target_rows]
    tb = min(reach) if reach else max(fitting)
    # Dual-TensorCore chips (v7x): keep >= 2 grid steps so the "parallel" axis
    # can actually be sharded across both cores.
    if num_tc > 1 and B // tb < num_tc:
        multi = [t for t in fitting if B // t >= num_tc]
        if multi:
            tb = max(multi)
    return tb


# --------------------------------------------------------------------------
# Parameter prep (run once, not per forward call)
# --------------------------------------------------------------------------
def prepare_params(wq, bq, wk, bk, wv, bv, wp, bp, *, seq_len, lane_pad=128):
    """wq/wk/wv: (D, D); bq/bk/bv: (1, D); wp: (L*D, O) (PyTorch (O, L*D)
    projector weight pre-transposed); bp: (1, O)."""
    D = wq.shape[0]
    L = seq_len
    O = bp.shape[-1]
    O_pad = ((O + lane_pad - 1) // lane_pad) * lane_pad

    # Fold the 1/sqrt(D) attention scale into the query projection and fuse
    # Q/K/V into one (D, 3D) bf16 weight (one wide MXU matmul in the kernel).
    scale = 1.0 / jnp.sqrt(jnp.float32(D))
    wqkv = jnp.concatenate([wq * scale, wk, wv], axis=1).astype(jnp.bfloat16)
    bqkv = jnp.concatenate([bq * scale, bk, bv], axis=1).astype(jnp.float32)

    # wp as (L, D, O_pad): per-sequence-position (D, O) slabs, zero-padded on
    # the lane (output) axis so the kernel's store is lane-dense.
    wp3 = wp.reshape(L, D, O)
    wp3 = jnp.pad(wp3, ((0, 0), (0, 0), (0, O_pad - O))).astype(jnp.bfloat16)
    bp_pad = jnp.pad(bp, ((0, 0), (0, O_pad - O))).astype(jnp.float32)

    return dict(wqkv=wqkv, bqkv=bqkv, wp=wp3, bp=bp_pad, out_dim=O)


# --------------------------------------------------------------------------
# Wrapper
# --------------------------------------------------------------------------
def self_attention_projector(x, params, *, block_b=None):
    """x: (B, L, D); params from prepare_params().  Returns (B, O) float32."""
    B, L, D = x.shape
    wqkv, bqkv, wp3, bp = params["wqkv"], params["bqkv"], params["wp"], params["bp"]
    O = params["out_dim"]
    O_pad = bp.shape[-1]

    kind = _device_kind()
    num_tc = 2 if "v7" in kind else 1            # v7x: 2 TensorCores per chip
    target_rows = 128 if "v5" in kind else 256   # MXU M-dim fill target

    cap = _vmem_capacity_bytes()
    budget = cap // 2                            # tile-picking budget, headroom
    tb = block_b if block_b is not None else _pick_batch_block(
        B, L, D, O_pad, target_rows=target_rows, vmem_budget=budget,
        num_tc=num_tc)
    assert B % tb == 0, "batch block must divide the batch size"
    grid = (B // tb,)

    est = _footprint_bytes(tb, L, D, O_pad)
    vmem_limit = int(min(cap * 3 // 4, max(2 * est + (8 << 20), 32 << 20)))

    def _resident_spec(shape, single_buffer):
        zeros = (0,) * len(shape)
        index_map = lambda b: zeros
        if single_buffer:
            # Constant-index weights stay resident; single-buffer them to halve
            # their VMEM footprint (no double-buffer needed — never re-DMA'd).
            return pl.BlockSpec(shape, index_map, pipeline_mode=pl.Buffered(1))
        return pl.BlockSpec(shape, index_map)

    def run(single_buffer_weights):
        in_specs = [
            pl.BlockSpec((tb, L, D), lambda b: (b, 0, 0)),            # x tile
            _resident_spec((D, 3 * D), single_buffer_weights),        # wqkv
            _resident_spec((1, 3 * D), single_buffer_weights),        # bqkv
            _resident_spec((L, D, O_pad), single_buffer_weights),     # wp (L,D,O)
            _resident_spec((1, O_pad), single_buffer_weights),        # bp
        ]
        return pl.pallas_call(
            _attn_projector_kernel,
            out_shape=jax.ShapeDtypeStruct((B, O_pad), jnp.float32),
            grid_spec=pltpu.PrefetchScalarGridSpec(
                num_scalar_prefetch=0,
                grid=grid,
                in_specs=in_specs,
                out_specs=pl.BlockSpec((tb, O_pad), lambda b: (b, 0)),
            ),
            compiler_params=pltpu.CompilerParams(
                dimension_semantics=("parallel",),
                vmem_limit_bytes=vmem_limit,
            ),
        )(x, wqkv, bqkv, wp3, bp)

    try:
        out_padded = run(True)
    except Exception:
        # pipeline_mode / pl.Buffered(1) not accepted by this jax build:
        # fall back to default double-buffering for the resident weights.
        out_padded = run(False)

    return out_padded[:, :O] if O_pad != O else out_padded


# --------------------------------------------------------------------------
# Pure-JAX reference (mirrors the PyTorch forward)
# --------------------------------------------------------------------------
def _reference(x, wq, bq, wk, bk, wv, bv, wp, bp):
    q = x @ wq + bq
    k = x @ wk + bk
    v = x @ wv + bv
    D = x.shape[-1]
    scores = jnp.einsum('bld,bmd->blm', q, k) / jnp.sqrt(jnp.float32(D))
    attn = jax.nn.softmax(scores, axis=2)
    weighted = jnp.einsum('blm,bmd->bld', attn, v)
    B = x.shape[0]
    emb = weighted.reshape(B, -1)
    return emb @ wp + bp


if __name__ == "__main__":
    B, L, D, O = 2, 8, 32, 16   # batch, seuqence_lenth, input_dim, output_dim

    key = jax.random.PRNGKey(0)
    ks = jax.random.split(key, 9)
    x  = jax.random.normal(ks[0], (B, L, D), dtype=jnp.float32)
    wq = jax.random.normal(ks[1], (D, D), dtype=jnp.float32) * 0.1
    bq = jax.random.normal(ks[2], (1, D), dtype=jnp.float32) * 0.1
    wk = jax.random.normal(ks[3], (D, D), dtype=jnp.float32) * 0.1
    bk = jax.random.normal(ks[4], (1, D), dtype=jnp.float32) * 0.1
    wv = jax.random.normal(ks[5], (D, D), dtype=jnp.float32) * 0.1
    bv = jax.random.normal(ks[6], (1, D), dtype=jnp.float32) * 0.1
    # Projector weight: PyTorch stores (O, L*D); kept pre-transposed (L*D, O)
    # so the contraction matches weighted.view(B, -1) @ Wp^T exactly.
    wp = jax.random.normal(ks[7], (L * D, O), dtype=jnp.float32) * 0.1
    bp = jax.random.normal(ks[8], (1, O), dtype=jnp.float32) * 0.1

    params = prepare_params(wq, bq, wk, bk, wv, bv, wp, bp, seq_len=L)
    out = self_attention_projector(x, params)
    out = jax.block_until_ready(out)

    ref = _reference(x, wq, bq, wk, bk, wv, bv, wp, bp)
    assert out.shape == (B, O)
    # Tolerance loosened for bf16 MXU operands (f32 accumulation) and the
    # EUP approximate reciprocal in the softmax denominator.
    assert jnp.allclose(out, ref, atol=7e-2, rtol=5e-2), "mismatch vs reference"
    print("KERNEL_OK")
</pallas_src>

<mosaic_0001>
module attributes {stable_mosaic.version = 11 : i64} {
  func.func @_attn_projector_kernel(%arg0: i32, %arg1: memref<2x8x32xf32, #tpu.memory_space<vmem>>, %arg2: memref<32x96xbf16, #tpu.memory_space<vmem>>, %arg3: memref<1x96xf32, #tpu.memory_space<vmem>>, %arg4: memref<8x32x128xbf16, #tpu.memory_space<vmem>>, %arg5: memref<1x128xf32, #tpu.memory_space<vmem>>, %arg6: memref<2x128xf32, #tpu.memory_space<vmem>>) attributes {dimension_semantics = [#tpu.dimension_semantics<parallel>], iteration_bounds = array<i64: 1>, scalar_prefetch = 0 : i64, scratch_operands = 0 : i64, tpu.core_type = #tpu.core_type<tc>, window_params = [{transform_indices = @transform_0, window_bounds = array<i64: 2, 8, 32>}, {pipeline_mode = #tpu.pipeline_mode<synchronous>, transform_indices = @transform_1, window_bounds = array<i64: 32, 96>}, {pipeline_mode = #tpu.pipeline_mode<synchronous>, transform_indices = @transform_2, window_bounds = array<i64: 1, 96>}, {pipeline_mode = #tpu.pipeline_mode<synchronous>, transform_indices = @transform_3, window_bounds = array<i64: 8, 32, 128>}, {pipeline_mode = #tpu.pipeline_mode<synchronous>, transform_indices = @transform_4, window_bounds = array<i64: 1, 128>}, {transform_indices = @transform_5, window_bounds = array<i64: 2, 128>}]} {
    %c0 = arith.constant 0 : index
    %c0_0 = arith.constant 0 : index
    %c0_1 = arith.constant 0 : index
    %0 = vector.load %arg1[%c0, %c0_0, %c0_1] : memref<2x8x32xf32, #tpu.memory_space<vmem>>, vector<2x8x32xf32>
    %1 = arith.truncf %0 : vector<2x8x32xf32> to vector<2x8x32xbf16>
    %2 = vector.shape_cast %1 : vector<2x8x32xbf16> to vector<16x32xbf16>
    %c0_2 = arith.constant 0 : index
    %c0_3 = arith.constant 0 : index
    %3 = vector.load %arg2[%c0_2, %c0_3] : memref<32x96xbf16, #tpu.memory_space<vmem>>, vector<32x96xbf16>
    %cst = arith.constant dense<0.000000e+00> : vector<16x96xf32>
    %4 = tpu.matmul %2, %3, %cst {dimension_numbers = #tpu.dot_dimension_numbers<[1], [0], [0], [1], [0, 0, 1, 1], [], []>} : vector<16x32xbf16>, vector<32x96xbf16>, vector<16x96xf32> -> vector<16x96xf32>
    %c0_4 = arith.constant 0 : index
    %c0_5 = arith.constant 0 : index
    %5 = vector.load %arg3[%c0_4, %c0_5] : memref<1x96xf32, #tpu.memory_space<vmem>>, vector<1x96xf32>
    %6 = vector.broadcast %5 : vector<1x96xf32> to vector<16x96xf32>
    %7 = arith.addf %4, %6 : vector<16x96xf32>
    %8 = vector.shape_cast %7 : vector<16x96xf32> to vector<2x8x96xf32>
    %9 = vector.extract_strided_slice %8 {offsets = [0, 0, 0], sizes = [2, 8, 32], strides = [1, 1, 1]} : vector<2x8x96xf32> to vector<2x8x32xf32>
    %10 = vector.extract_strided_slice %8 {offsets = [0, 0, 32], sizes = [2, 8, 32], strides = [1, 1, 1]} : vector<2x8x96xf32> to vector<2x8x32xf32>
    %11 = vector.extract_strided_slice %8 {offsets = [0, 0, 64], sizes = [2, 8, 32], strides = [1, 1, 1]} : vector<2x8x96xf32> to vector<2x8x32xf32>
    %12 = arith.truncf %9 : vector<2x8x32xf32> to vector<2x8x32xbf16>
    %13 = arith.truncf %10 : vector<2x8x32xf32> to vector<2x8x32xbf16>
    "tpu.trace_start"() <{level = 10 : i32, message = "bld,bmd->blm"}> : () -> ()
    %cst_6 = arith.constant dense<0.000000e+00> : vector<2x8x8xf32>
    %14 = tpu.matmul %12, %13, %cst_6 {dimension_numbers = #tpu.dot_dimension_numbers<[2], [2], [1], [1], [0, 0, 0, 1, 1, 1], [0], [0]>} : vector<2x8x32xbf16>, vector<2x8x32xbf16>, vector<2x8x8xf32> -> vector<2x8x8xf32>
    "tpu.trace_stop"() : () -> ()
    %cst_7 = arith.constant dense<0xFF800000> : vector<2x8xf32>
    %15 = vector.multi_reduction <maximumf>, %14, %cst_7 [2] : vector<2x8x8xf32> to vector<2x8xf32>
    %16 = vector.shape_cast %15 : vector<2x8xf32> to vector<2x8x1xf32>
    %17 = vector.broadcast %16 : vector<2x8x1xf32> to vector<2x8x8xf32>
    %18 = arith.subf %14, %17 : vector<2x8x8xf32>
    %19 = math.exp %18 : vector<2x8x8xf32>
    %cst_8 = arith.constant dense<0.000000e+00> : vector<2x8xf32>
    %20 = vector.multi_reduction <add>, %19, %cst_8 [2] : vector<2x8x8xf32> to vector<2x8xf32>
    %21 = vector.shape_cast %20 : vector<2x8xf32> to vector<2x8x1xf32>
    %22 = tpu.reciprocal %21 {approx = true} : vector<2x8x1xf32> -> vector<2x8x1xf32>
    %23 = vector.broadcast %22 : vector<2x8x1xf32> to vector<2x8x8xf32>
    %24 = arith.mulf %19, %23 : vector<2x8x8xf32>
    %25 = arith.truncf %24 : vector<2x8x8xf32> to vector<2x8x8xbf16>
    %26 = arith.truncf %11 : vector<2x8x32xf32> to vector<2x8x32xbf16>
    "tpu.trace_start"() <{level = 10 : i32, message = "blm,bmd->bld"}> : () -> ()
    %cst_9 = arith.constant dense<0.000000e+00> : vector<2x8x32xf32>
    %27 = tpu.matmul %25, %26, %cst_9 {dimension_numbers = #tpu.dot_dimension_numbers<[2], [1], [1], [2], [0, 0, 0, 1, 1, 2], [0], [0]>} : vector<2x8x8xbf16>, vector<2x8x32xbf16>, vector<2x8x32xf32> -> vector<2x8x32xf32>
    "tpu.trace_stop"() : () -> ()
    %28 = arith.truncf %27 : vector<2x8x32xf32> to vector<2x8x32xbf16>
    %cst_10 = arith.constant 0.000000e+00 : f32
    %29 = vector.broadcast %cst_10 : f32 to vector<2x128xf32>
    %30 = vector.extract_strided_slice %28 {offsets = [0, 0, 0], sizes = [2, 1, 32], strides = [1, 1, 1]} : vector<2x8x32xbf16> to vector<2x1x32xbf16>
    %31 = vector.shape_cast %30 : vector<2x1x32xbf16> to vector<2x32xbf16>
    %c0_11 = arith.constant 0 : index
    %c0_12 = arith.constant 0 : index
    %c0_13 = arith.constant 0 : index
    %32 = vector.load %arg4[%c0_11, %c0_12, %c0_13] : memref<8x32x128xbf16, #tpu.memory_space<vmem>>, vector<1x32x128xbf16>
    %33 = vector.shape_cast %32 : vector<1x32x128xbf16> to vector<32x128xbf16>
    %cst_14 = arith.constant dense<0.000000e+00> : vector<2x128xf32>
    %34 = tpu.matmul %31, %33, %cst_14 {dimension_numbers = #tpu.dot_dimension_numbers<[1], [0], [0], [1], [0, 0, 1, 1], [], []>} : vector<2x32xbf16>, vector<32x128xbf16>, vector<2x128xf32> -> vector<2x128xf32>
    %35 = arith.addf %29, %34 : vector<2x128xf32>
    %36 = vector.extract_strided_slice %28 {offsets = [0, 1, 0], sizes = [2, 1, 32], strides = [1, 1, 1]} : vector<2x8x32xbf16> to vector<2x1x32xbf16>
    %37 = vector.shape_cast %36 : vector<2x1x32xbf16> to vector<2x32xbf16>
    %c1 = arith.constant 1 : index
    %c0_15 = arith.constant 0 : index
    %c0_16 = arith.constant 0 : index
    %38 = vector.load %arg4[%c1, %c0_15, %c0_16] : memref<8x32x128xbf16, #tpu.memory_space<vmem>>, vector<1x32x128xbf16>
    %39 = vector.shape_cast %38 : vector<1x32x128xbf16> to vector<32x128xbf16>
    %cst_17 = arith.constant dense<0.000000e+00> : vector<2x128xf32>
    %40 = tpu.matmul %37, %39, %cst_17 {dimension_numbers = #tpu.dot_dimension_numbers<[1], [0], [0], [1], [0, 0, 1, 1], [], []>} : vector<2x32xbf16>, vector<32x128xbf16>, vector<2x128xf32> -> vector<2x128xf32>
    %41 = arith.addf %35, %40 : vector<2x128xf32>
    %42 = vector.extract_strided_slice %28 {offsets = [0, 2, 0], sizes = [2, 1, 32], strides = [1, 1, 1]} : vector<2x8x32xbf16> to vector<2x1x32xbf16>
    %43 = vector.shape_cast %42 : vector<2x1x32xbf16> to vector<2x32xbf16>
    %c2 = arith.constant 2 : index
    %c0_18 = arith.constant 0 : index
    %c0_19 = arith.constant 0 : index
    %44 = vector.load %arg4[%c2, %c0_18, %c0_19] : memref<8x32x128xbf16, #tpu.memory_space<vmem>>, vector<1x32x128xbf16>
    %45 = vector.shape_cast %44 : vector<1x32x128xbf16> to vector<32x128xbf16>
    %cst_20 = arith.constant dense<0.000000e+00> : vector<2x128xf32>
    %46 = tpu.matmul %43, %45, %cst_20 {dimension_numbers = #tpu.dot_dimension_numbers<[1], [0], [0], [1], [0, 0, 1, 1], [], []>} : vector<2x32xbf16>, vector<32x128xbf16>, vector<2x128xf32> -> vector<2x128xf32>
    %47 = arith.addf %41, %46 : vector<2x128xf32>
    %48 = vector.extract_strided_slice %28 {offsets = [0, 3, 0], sizes = [2, 1, 32], strides = [1, 1, 1]} : vector<2x8x32xbf16> to vector<2x1x32xbf16>
    %49 = vector.shape_cast %48 : vector<2x1x32xbf16> to vector<2x32xbf16>
    %c3 = arith.constant 3 : index
    %c0_21 = arith.constant 0 : index
    %c0_22 = arith.constant 0 : index
    %50 = vector.load %arg4[%c3, %c0_21, %c0_22] : memref<8x32x128xbf16, #tpu.memory_space<vmem>>, vector<1x32x128xbf16>
    %51 = vector.shape_cast %50 : vector<1x32x128xbf16> to vector<32x128xbf16>
    %cst_23 = arith.constant dense<0.000000e+00> : vector<2x128xf32>
    %52 = tpu.matmul %49, %51, %cst_23 {dimension_numbers = #tpu.dot_dimension_numbers<[1], [0], [0], [1], [0, 0, 1, 1], [], []>} : vector<2x32xbf16>, vector<32x128xbf16>, vector<2x128xf32> -> vector<2x128xf32>
    %53 = arith.addf %47, %52 : vector<2x128xf32>
    %54 = vector.extract_strided_slice %28 {offsets = [0, 4, 0], sizes = [2, 1, 32], strides = [1, 1, 1]} : vector<2x8x32xbf16> to vector<2x1x32xbf16>
    %55 = vector.shape_cast %54 : vector<2x1x32xbf16> to vector<2x32xbf16>
    %c4 = arith.constant 4 : index
    %c0_24 = arith.constant 0 : index
    %c0_25 = arith.constant 0 : index
    %56 = vector.load %arg4[%c4, %c0_24, %c0_25] : memref<8x32x128xbf16, #tpu.memory_space<vmem>>, vector<1x32x128xbf16>
    %57 = vector.shape_cast %56 : vector<1x32x128xbf16> to vector<32x128xbf16>
    %cst_26 = arith.constant dense<0.000000e+00> : vector<2x128xf32>
    %58 = tpu.matmul %55, %57, %cst_26 {dimension_numbers = #tpu.dot_dimension_numbers<[1], [0], [0], [1], [0, 0, 1, 1], [], []>} : vector<2x32xbf16>, vector<32x128xbf16>, vector<2x128xf32> -> vector<2x128xf32>
    %59 = arith.addf %53, %58 : vector<2x128xf32>
    %60 = vector.extract_strided_slice %28 {offsets = [0, 5, 0], sizes = [2, 1, 32], strides = [1, 1, 1]} : vector<2x8x32xbf16> to vector<2x1x32xbf16>
    %61 = vector.shape_cast %60 : vector<2x1x32xbf16> to vector<2x32xbf16>
    %c5 = arith.constant 5 : index
    %c0_27 = arith.constant 0 : index
    %c0_28 = arith.constant 0 : index
    %62 = vector.load %arg4[%c5, %c0_27, %c0_28] : memref<8x32x128xbf16, #tpu.memory_space<vmem>>, vector<1x32x128xbf16>
    %63 = vector.shape_cast %62 : vector<1x32x128xbf16> to vector<32x128xbf16>
    %cst_29 = arith.constant dense<0.000000e+00> : vector<2x128xf32>
    %64 = tpu.matmul %61, %63, %cst_29 {dimension_numbers = #tpu.dot_dimension_numbers<[1], [0], [0], [1], [0, 0, 1, 1], [], []>} : vector<2x32xbf16>, vector<32x128xbf16>, vector<2x128xf32> -> vector<2x128xf32>
    %65 = arith.addf %59, %64 : vector<2x128xf32>
    %66 = vector.extract_strided_slice %28 {offsets = [0, 6, 0], sizes = [2, 1, 32], strides = [1, 1, 1]} : vector<2x8x32xbf16> to vector<2x1x32xbf16>
    %67 = vector.shape_cast %66 : vector<2x1x32xbf16> to vector<2x32xbf16>
    %c6 = arith.constant 6 : index
    %c0_30 = arith.constant 0 : index
    %c0_31 = arith.constant 0 : index
    %68 = vector.load %arg4[%c6, %c0_30, %c0_31] : memref<8x32x128xbf16, #tpu.memory_space<vmem>>, vector<1x32x128xbf16>
    %69 = vector.shape_cast %68 : vector<1x32x128xbf16> to vector<32x128xbf16>
    %cst_32 = arith.constant dense<0.000000e+00> : vector<2x128xf32>
    %70 = tpu.matmul %67, %69, %cst_32 {dimension_numbers = #tpu.dot_dimension_numbers<[1], [0], [0], [1], [0, 0, 1, 1], [], []>} : vector<2x32xbf16>, vector<32x128xbf16>, vector<2x128xf32> -> vector<2x128xf32>
    %71 = arith.addf %65, %70 : vector<2x128xf32>
    %72 = vector.extract_strided_slice %28 {offsets = [0, 7, 0], sizes = [2, 1, 32], strides = [1, 1, 1]} : vector<2x8x32xbf16> to vector<2x1x32xbf16>
    %73 = vector.shape_cast %72 : vector<2x1x32xbf16> to vector<2x32xbf16>
    %c7 = arith.constant 7 : index
    %c0_33 = arith.constant 0 : index
    %c0_34 = arith.constant 0 : index
    %74 = vector.load %arg4[%c7, %c0_33, %c0_34] : memref<8x32x128xbf16, #tpu.memory_space<vmem>>, vector<1x32x128xbf16>
    %75 = vector.shape_cast %74 : vector<1x32x128xbf16> to vector<32x128xbf16>
    %cst_35 = arith.constant dense<0.000000e+00> : vector<2x128xf32>
    %76 = tpu.matmul %73, %75, %cst_35 {dimension_numbers = #tpu.dot_dimension_numbers<[1], [0], [0], [1], [0, 0, 1, 1], [], []>} : vector<2x32xbf16>, vector<32x128xbf16>, vector<2x128xf32> -> vector<2x128xf32>
    %77 = arith.addf %71, %76 : vector<2x128xf32>
    %c0_36 = arith.constant 0 : index
    %c0_37 = arith.constant 0 : index
    %78 = vector.load %arg5[%c0_36, %c0_37] : memref<1x128xf32, #tpu.memory_space<vmem>>, vector<1x128xf32>
    %79 = vector.broadcast %78 : vector<1x128xf32> to vector<2x128xf32>
    %80 = arith.addf %77, %79 : vector<2x128xf32>
    %c0_38 = arith.constant 0 : index
    %c0_39 = arith.constant 0 : index
    %81 = vector.load %arg6[%c0_38, %c0_39] : memref<2x128xf32, #tpu.memory_space<vmem>>, vector<2x128xf32>
    tpu.vector_store %arg6[%c0_38, %c0_39], %80 {strides = array<i32>} : memref<2x128xf32, #tpu.memory_space<vmem>>, vector<2x128xf32>,
    return
  }
  func.func @transform_0(%arg0: i32) -> (i32, i32, i32) {
    %c0_i32 = arith.constant 0 : i32
    %c0_i32_0 = arith.constant 0 : i32
    %c0_i32_1 = arith.constant 0 : i32
    return %arg0, %c0_i32, %c0_i32_0 : i32, i32, i32
  }
  func.func @transform_1(%arg0: i32) -> (i32, i32) {
    %c0_i32 = arith.constant 0 : i32
    %c0_i32_0 = arith.constant 0 : i32
    %c0_i32_1 = arith.constant 0 : i32
    return %c0_i32, %c0_i32_0 : i32, i32
  }
  func.func @transform_2(%arg0: i32) -> (i32, i32) {
    %c0_i32 = arith.constant 0 : i32
    %c0_i32_0 = arith.constant 0 : i32
    %c0_i32_1 = arith.constant 0 : i32
    return %c0_i32, %c0_i32_0 : i32, i32
  }
  func.func @transform_3(%arg0: i32) -> (i32, i32, i32) {
    %c0_i32 = arith.constant 0 : i32
    %c0_i32_0 = arith.constant 0 : i32
    %c0_i32_1 = arith.constant 0 : i32
    %c0_i32_2 = arith.constant 0 : i32
    return %c0_i32, %c0_i32_0, %c0_i32_1 : i32, i32, i32
  }
  func.func @transform_4(%arg0: i32) -> (i32, i32) {
    %c0_i32 = arith.constant 0 : i32
    %c0_i32_0 = arith.constant 0 : i32
    %c0_i32_1 = arith.constant 0 : i32
    return %c0_i32, %c0_i32_0 : i32, i32
  }
  func.func @transform_5(%arg0: i32) -> (i32, i32) {
    %c0_i32 = arith.constant 0 : i32
    %c0_i32_0 = arith.constant 0 : i32
    return %arg0, %c0_i32 : i32, i32
  }
}

module attributes {stable_mosaic.version = 11 : i64} {
  func.func @_attn_projector_kernel(%arg0: i32, %arg1: memref<2x8x32xf32, #tpu.memory_space<vmem>>, %arg2: memref<32x96xbf16, #tpu.memory_space<vmem>>, %arg3: memref<1x96xf32, #tpu.memory_space<vmem>>, %arg4: memref<8x32x128xbf16, #tpu.memory_space<vmem>>, %arg5: memref<1x128xf32, #tpu.memory_space<vmem>>, %arg6: memref<2x128xf32, #tpu.memory_space<vmem>>) attributes {dimension_semantics = [#tpu.dimension_semantics<parallel>], iteration_bounds = array<i64: 1>, scalar_prefetch = 0 : i64, scratch_operands = 0 : i64, tpu.core_type = #tpu.core_type<tc>, window_params = [{transform_indices = @transform_0, window_bounds = array<i64: 2, 8, 32>}, {pipeline_mode = #tpu.pipeline_mode<synchronous>, transform_indices = @transform_1, window_bounds = array<i64: 32, 96>}, {pipeline_mode = #tpu.pipeline_mode<synchronous>, transform_indices = @transform_2, window_bounds = array<i64: 1, 96>}, {pipeline_mode = #tpu.pipeline_mode<synchronous>, transform_indices = @transform_3, window_bounds = array<i64: 8, 32, 128>}, {pipeline_mode = #tpu.pipeline_mode<synchronous>, transform_indices = @transform_4, window_bounds = array<i64: 1, 128>}, {transform_indices = @transform_5, window_bounds = array<i64: 2, 128>}]} {
    %c0 = arith.constant 0 : index
    %c0_0 = arith.constant 0 : index
    %c0_1 = arith.constant 0 : index
    %0 = vector.load %arg1[%c0, %c0_0, %c0_1] : memref<2x8x32xf32, #tpu.memory_space<vmem>>, vector<2x8x32xf32>
    %1 = arith.truncf %0 : vector<2x8x32xf32> to vector<2x8x32xbf16>
    %2 = vector.shape_cast %1 : vector<2x8x32xbf16> to vector<16x32xbf16>
    %c0_2 = arith.constant 0 : index
    %c0_3 = arith.constant 0 : index
    %3 = vector.load %arg2[%c0_2, %c0_3] : memref<32x96xbf16, #tpu.memory_space<vmem>>, vector<32x96xbf16>
    %cst = arith.constant dense<0.000000e+00> : vector<16x96xf32>
    %4 = tpu.matmul %2, %3, %cst {dimension_numbers = #tpu.dot_dimension_numbers<[1], [0], [0], [1], [0, 0, 1, 1], [], []>} : vector<16x32xbf16>, vector<32x96xbf16>, vector<16x96xf32> -> vector<16x96xf32>
    %c0_4 = arith.constant 0 : index
    %c0_5 = arith.constant 0 : index
    %5 = vector.load %arg3[%c0_4, %c0_5] : memref<1x96xf32, #tpu.memory_space<vmem>>, vector<1x96xf32>
    %6 = vector.broadcast %5 : vector<1x96xf32> to vector<16x96xf32>
    %7 = arith.addf %4, %6 : vector<16x96xf32>
    %8 = vector.shape_cast %7 : vector<16x96xf32> to vector<2x8x96xf32>
    %9 = vector.extract_strided_slice %8 {offsets = [0, 0, 0], sizes = [2, 8, 32], strides = [1, 1, 1]} : vector<2x8x96xf32> to vector<2x8x32xf32>
    %10 = vector.extract_strided_slice %8 {offsets = [0, 0, 32], sizes = [2, 8, 32], strides = [1, 1, 1]} : vector<2x8x96xf32> to vector<2x8x32xf32>
    %11 = vector.extract_strided_slice %8 {offsets = [0, 0, 64], sizes = [2, 8, 32], strides = [1, 1, 1]} : vector<2x8x96xf32> to vector<2x8x32xf32>
    %12 = arith.truncf %9 : vector<2x8x32xf32> to vector<2x8x32xbf16>
    %13 = arith.truncf %10 : vector<2x8x32xf32> to vector<2x8x32xbf16>
    "tpu.trace_start"() <{level = 10 : i32, message = "bld,bmd->blm"}> : () -> ()
    %cst_6 = arith.constant dense<0.000000e+00> : vector<2x8x8xf32>
    %14 = tpu.matmul %12, %13, %cst_6 {dimension_numbers = #tpu.dot_dimension_numbers<[2], [2], [1], [1], [0, 0, 0, 1, 1, 1], [0], [0]>} : vector<2x8x32xbf16>, vector<2x8x32xbf16>, vector<2x8x8xf32> -> vector<2x8x8xf32>
    "tpu.trace_stop"() : () -> ()
    %cst_7 = arith.constant dense<0xFF800000> : vector<2x8xf32>
    %15 = vector.multi_reduction <maximumf>, %14, %cst_7 [2] : vector<2x8x8xf32> to vector<2x8xf32>
    %16 = vector.shape_cast %15 : vector<2x8xf32> to vector<2x8x1xf32>
    %17 = vector.broadcast %16 : vector<2x8x1xf32> to vector<2x8x8xf32>
    %18 = arith.subf %14, %17 : vector<2x8x8xf32>
    %19 = math.exp %18 : vector<2x8x8xf32>
    %cst_8 = arith.constant dense<0.000000e+00> : vector<2x8xf32>
    %20 = vector.multi_reduction <add>, %19, %cst_8 [2] : vector<2x8x8xf32> to vector<2x8xf32>
    %21 = vector.shape_cast %20 : vector<2x8xf32> to vector<2x8x1xf32>
    %22 = tpu.reciprocal %21 {approx = true} : vector<2x8x1xf32> -> vector<2x8x1xf32>
    %23 = vector.broadcast %22 : vector<2x8x1xf32> to vector<2x8x8xf32>
    %24 = arith.mulf %19, %23 : vector<2x8x8xf32>
    %25 = arith.truncf %24 : vector<2x8x8xf32> to vector<2x8x8xbf16>
    %26 = arith.truncf %11 : vector<2x8x32xf32> to vector<2x8x32xbf16>
    "tpu.trace_start"() <{level = 10 : i32, message = "blm,bmd->bld"}> : () -> ()
    %cst_9 = arith.constant dense<0.000000e+00> : vector<2x8x32xf32>
    %27 = tpu.matmul %25, %26, %cst_9 {dimension_numbers = #tpu.dot_dimension_numbers<[2], [1], [1], [2], [0, 0, 0, 1, 1, 2], [0], [0]>} : vector<2x8x8xbf16>, vector<2x8x32xbf16>, vector<2x8x32xf32> -> vector<2x8x32xf32>
    "tpu.trace_stop"() : () -> ()
    %28 = arith.truncf %27 : vector<2x8x32xf32> to vector<2x8x32xbf16>
    %cst_10 = arith.constant 0.000000e+00 : f32
    %29 = vector.broadcast %cst_10 : f32 to vector<2x128xf32>
    %30 = vector.extract_strided_slice %28 {offsets = [0, 0, 0], sizes = [2, 1, 32], strides = [1, 1, 1]} : vector<2x8x32xbf16> to vector<2x1x32xbf16>
    %31 = vector.shape_cast %30 : vector<2x1x32xbf16> to vector<2x32xbf16>
    %c0_11 = arith.constant 0 : index
    %c0_12 = arith.constant 0 : index
    %c0_13 = arith.constant 0 : index
    %32 = vector.load %arg4[%c0_11, %c0_12, %c0_13] : memref<8x32x128xbf16, #tpu.memory_space<vmem>>, vector<1x32x128xbf16>
    %33 = vector.shape_cast %32 : vector<1x32x128xbf16> to vector<32x128xbf16>
    %cst_14 = arith.constant dense<0.000000e+00> : vector<2x128xf32>
    %34 = tpu.matmul %31, %33, %cst_14 {dimension_numbers = #tpu.dot_dimension_numbers<[1], [0], [0], [1], [0, 0, 1, 1], [], []>} : vector<2x32xbf16>, vector<32x128xbf16>, vector<2x128xf32> -> vector<2x128xf32>
    %35 = arith.addf %29, %34 : vector<2x128xf32>
    %36 = vector.extract_strided_slice %28 {offsets = [0, 1, 0], sizes = [2, 1, 32], strides = [1, 1, 1]} : vector<2x8x32xbf16> to vector<2x1x32xbf16>
    %37 = vector.shape_cast %36 : vector<2x1x32xbf16> to vector<2x32xbf16>
    %c1 = arith.constant 1 : index
    %c0_15 = arith.constant 0 : index
    %c0_16 = arith.constant 0 : index
    %38 = vector.load %arg4[%c1, %c0_15, %c0_16] : memref<8x32x128xbf16, #tpu.memory_space<vmem>>, vector<1x32x128xbf16>
    %39 = vector.shape_cast %38 : vector<1x32x128xbf16> to vector<32x128xbf16>
    %cst_17 = arith.constant dense<0.000000e+00> : vector<2x128xf32>
    %40 = tpu.matmul %37, %39, %cst_17 {dimension_numbers = #tpu.dot_dimension_numbers<[1], [0], [0], [1], [0, 0, 1, 1], [], []>} : vector<2x32xbf16>, vector<32x128xbf16>, vector<2x128xf32> -> vector<2x128xf32>
    %41 = arith.addf %35, %40 : vector<2x128xf32>
    %42 = vector.extract_strided_slice %28 {offsets = [0, 2, 0], sizes = [2, 1, 32], strides = [1, 1, 1]} : vector<2x8x32xbf16> to vector<2x1x32xbf16>
    %43 = vector.shape_cast %42 : vector<2x1x32xbf16> to vector<2x32xbf16>
    %c2 = arith.constant 2 : index
    %c0_18 = arith.constant 0 : index
    %c0_19 = arith.constant 0 : index
    %44 = vector.load %arg4[%c2, %c0_18, %c0_19] : memref<8x32x128xbf16, #tpu.memory_space<vmem>>, vector<1x32x128xbf16>
    %45 = vector.shape_cast %44 : vector<1x32x128xbf16> to vector<32x128xbf16>
    %cst_20 = arith.constant dense<0.000000e+00> : vector<2x128xf32>
    %46 = tpu.matmul %43, %45, %cst_20 {dimension_numbers = #tpu.dot_dimension_numbers<[1], [0], [0], [1], [0, 0, 1, 1], [], []>} : vector<2x32xbf16>, vector<32x128xbf16>, vector<2x128xf32> -> vector<2x128xf32>
    %47 = arith.addf %41, %46 : vector<2x128xf32>
    %48 = vector.extract_strided_slice %28 {offsets = [0, 3, 0], sizes = [2, 1, 32], strides = [1, 1, 1]} : vector<2x8x32xbf16> to vector<2x1x32xbf16>
    %49 = vector.shape_cast %48 : vector<2x1x32xbf16> to vector<2x32xbf16>
    %c3 = arith.constant 3 : index
    %c0_21 = arith.constant 0 : index
    %c0_22 = arith.constant 0 : index
    %50 = vector.load %arg4[%c3, %c0_21, %c0_22] : memref<8x32x128xbf16, #tpu.memory_space<vmem>>, vector<1x32x128xbf16>
    %51 = vector.shape_cast %50 : vector<1x32x128xbf16> to vector<32x128xbf16>
    %cst_23 = arith.constant dense<0.000000e+00> : vector<2x128xf32>
    %52 = tpu.matmul %49, %51, %cst_23 {dimension_numbers = #tpu.dot_dimension_numbers<[1], [0], [0], [1], [0, 0, 1, 1], [], []>} : vector<2x32xbf16>, vector<32x128xbf16>, vector<2x128xf32> -> vector<2x128xf32>
    %53 = arith.addf %47, %52 : vector<2x128xf32>
    %54 = vector.extract_strided_slice %28 {offsets = [0, 4, 0], sizes = [2, 1, 32], strides = [1, 1, 1]} : vector<2x8x32xbf16> to vector<2x1x32xbf16>
    %55 = vector.shape_cast %54 : vector<2x1x32xbf16> to vector<2x32xbf16>
    %c4 = arith.constant 4 : index
    %c0_24 = arith.constant 0 : index
    %c0_25 = arith.constant 0 : index
    %56 = vector.load %arg4[%c4, %c0_24, %c0_25] : memref<8x32x128xbf16, #tpu.memory_space<vmem>>, vector<1x32x128xbf16>
    %57 = vector.shape_cast %56 : vector<1x32x128xbf16> to vector<32x128xbf16>
    %cst_26 = arith.constant dense<0.000000e+00> : vector<2x128xf32>
    %58 = tpu.matmul %55, %57, %cst_26 {dimension_numbers = #tpu.dot_dimension_numbers<[1], [0], [0], [1], [0, 0, 1, 1], [], []>} : vector<2x32xbf16>, vector<32x128xbf16>, vector<2x128xf32> -> vector<2x128xf32>
    %59 = arith.addf %53, %58 : vector<2x128xf32>
    %60 = vector.extract_strided_slice %28 {offsets = [0, 5, 0], sizes = [2, 1, 32], strides = [1, 1, 1]} : vector<2x8x32xbf16> to vector<2x1x32xbf16>
    %61 = vector.shape_cast %60 : vector<2x1x32xbf16> to vector<2x32xbf16>
    %c5 = arith.constant 5 : index
    %c0_27 = arith.constant 0 : index
    %c0_28 = arith.constant 0 : index
    %62 = vector.load %arg4[%c5, %c0_27, %c0_28] : memref<8x32x128xbf16, #tpu.memory_space<vmem>>, vector<1x32x128xbf16>
    %63 = vector.shape_cast %62 : vector<1x32x128xbf16> to vector<32x128xbf16>
    %cst_29 = arith.constant dense<0.000000e+00> : vector<2x128xf32>
    %64 = tpu.matmul %61, %63, %cst_29 {dimension_numbers = #tpu.dot_dimension_numbers<[1], [0], [0], [1], [0, 0, 1, 1], [], []>} : vector<2x32xbf16>, vector<32x128xbf16>, vector<2x128xf32> -> vector<2x128xf32>
    %65 = arith.addf %59, %64 : vector<2x128xf32>
    %66 = vector.extract_strided_slice %28 {offsets = [0, 6, 0], sizes = [2, 1, 32], strides = [1, 1, 1]} : vector<2x8x32xbf16> to vector<2x1x32xbf16>
    %67 = vector.shape_cast %66 : vector<2x1x32xbf16> to vector<2x32xbf16>
    %c6 = arith.constant 6 : index
    %c0_30 = arith.constant 0 : index
    %c0_31 = arith.constant 0 : index
    %68 = vector.load %arg4[%c6, %c0_30, %c0_31] : memref<8x32x128xbf16, #tpu.memory_space<vmem>>, vector<1x32x128xbf16>
    %69 = vector.shape_cast %68 : vector<1x32x128xbf16> to vector<32x128xbf16>
    %cst_32 = arith.constant dense<0.000000e+00> : vector<2x128xf32>
    %70 = tpu.matmul %67, %69, %cst_32 {dimension_numbers = #tpu.dot_dimension_numbers<[1], [0], [0], [1], [0, 0, 1, 1], [], []>} : vector<2x32xbf16>, vector<32x128xbf16>, vector<2x128xf32> -> vector<2x128xf32>
    %71 = arith.addf %65, %70 : vector<2x128xf32>
    %72 = vector.extract_strided_slice %28 {offsets = [0, 7, 0], sizes = [2, 1, 32], strides = [1, 1, 1]} : vector<2x8x32xbf16> to vector<2x1x32xbf16>
    %73 = vector.shape_cast %72 : vector<2x1x32xbf16> to vector<2x32xbf16>
    %c7 = arith.constant 7 : index
    %c0_33 = arith.constant 0 : index
    %c0_34 = arith.constant 0 : index
    %74 = vector.load %arg4[%c7, %c0_33, %c0_34] : memref<8x32x128xbf16, #tpu.memory_space<vmem>>, vector<1x32x128xbf16>
    %75 = vector.shape_cast %74 : vector<1x32x128xbf16> to vector<32x128xbf16>
    %cst_35 = arith.constant dense<0.000000e+00> : vector<2x128xf32>
    %76 = tpu.matmul %73, %75, %cst_35 {dimension_numbers = #tpu.dot_dimension_numbers<[1], [0], [0], [1], [0, 0, 1, 1], [], []>} : vector<2x32xbf16>, vector<32x128xbf16>, vector<2x128xf32> -> vector<2x128xf32>
    %77 = arith.addf %71, %76 : vector<2x128xf32>
    %c0_36 = arith.constant 0 : index
    %c0_37 = arith.constant 0 : index
    %78 = vector.load %arg5[%c0_36, %c0_37] : memref<1x128xf32, #tpu.memory_space<vmem>>, vector<1x128xf32>
    %79 = vector.broadcast %78 : vector<1x128xf32> to vector<2x128xf32>
    %80 = arith.addf %77, %79 : vector<2x128xf32>
    %c0_38 = arith.constant 0 : index
    %c0_39 = arith.constant 0 : index
    %81 = vector.load %arg6[%c0_38, %c0_39] : memref<2x128xf32, #tpu.memory_space<vmem>>, vector<2x128xf32>
    tpu.vector_store %arg6[%c0_38, %c0_39], %80 {strides = array<i32>} : memref<2x128xf32, #tpu.memory_space<vmem>>, vector<2x128xf32>,
    return
  }
  func.func @transform_0(%arg0: i32) -> (i32, i32, i32) {
    %c0_i32 = arith.constant 0 : i32
    %c0_i32_0 = arith.constant 0 : i32
    %c0_i32_1 = arith.constant 0 : i32
    return %arg0, %c0_i32, %c0_i32_0 : i32, i32, i32
  }
  func.func @transform_1(%arg0: i32) -> (i32, i32) {
    %c0_i32 = arith.constant 0 : i32
    %c0_i32_0 = arith.constant 0 : i32
    %c0_i32_1 = arith.constant 0 : i32
    return %c0_i32, %c0_i32_0 : i32, i32
  }
  func.func @transform_2(%arg0: i32) -> (i32, i32) {
    %c0_i32 = arith.constant 0 : i32
    %c0_i32_0 = arith.constant 0 : i32
    %c0_i32_1 = arith.constant 0 : i32
    return %c0_i32, %c0_i32_0 : i32, i32
  }
  func.func @transform_3(%arg0: i32) -> (i32, i32, i32) {
    %c0_i32 = arith.constant 0 : i32
    %c0_i32_0 = arith.constant 0 : i32
    %c0_i32_1 = arith.constant 0 : i32
    %c0_i32_2 = arith.constant 0 : i32
    return %c0_i32, %c0_i32_0, %c0_i32_1 : i32, i32, i32
  }
  func.func @transform_4(%arg0: i32) -> (i32, i32) {
    %c0_i32 = arith.constant 0 : i32
    %c0_i32_0 = arith.constant 0 : i32
    %c0_i32_1 = arith.constant 0 : i32
    return %c0_i32, %c0_i32_0 : i32, i32
  }
  func.func @transform_5(%arg0: i32) -> (i32, i32) {
    %c0_i32 = arith.constant 0 : i32
    %c0_i32_0 = arith.constant 0 : i32
    return %arg0, %c0_i32 : i32, i32
  }
}

</mosaic_0001>

<bundles_post_ra>
// kernel: tpu_custom_call.1
= control target key start
LH: loop header
LB: loop body
LE: loop exit
PB: predicated region body
PF: predicated region fallthrough
CT: control target
= control target key end

     0   :  { %10 = vsyncpa [#allocation3], 0  ;;  %s1360_s0 = inlined_call_operand.hbm [shape: f32[2,8,32], index: 0, kind: input, shape index: {}]   ;;  %s1361_s1 = inlined_call_operand.hbm [shape: bf16[32,96], index: 1, kind: input, shape index: {}]   ;;  %s1362_s2 = inlined_call_operand.vmem [shape: f32[1,96], index: 2, kind: input, shape index: {}]   ;;  %s1363_s3 = inlined_call_operand.hbm [shape: bf16[8,32,128], index: 3, kind: input, shape index: {}]   ;;  %s1364_s4 = inlined_call_operand.vmem [shape: f32[1,128], index: 4, kind: input, shape index: {}]   ;;  %s1365_s5 = inlined_call_operand.hbm [shape: f32[2,128], index: 5, kind: output, shape index: {}]  }
   0x1   :  { %11 = vsyncpa [#allocation6], 0 }
   0x2   :  { %12 = vsyncpa [#allocation4], 0  ;;  %s1198_s18 = smov [#allocation5]  }
   0x3   :  { %s30_s19 = sshll.u32 %s1198_s18, 4  ;;  %s31_s19 = int_to_ptr.vmem [resolvable:$true] %s30_s19 }
   0x4   :  { %s1120_s20 = scalar_lea.vmem %s31_s19, 256  ;;  %p1125_p1 = scmp.lt.s32.totalorder %s31_s19, %s31_s19 }
   0x5   :  { %p1121_p0 = scmp.ne.s32.totalorder %s31_s19, %s1120_s20  ;;  %p1126_p2 = scmp.lt.s32.totalorder %s1120_s20, %s1120_s20 }
   0x7   :  { %p1127_p3 = por %p1126_p2, %p1125_p1 }
   0x9   :  { %p1128_p4 = pnand %p1127_p3, %p1121_p0 }
   0xb   :  { %1131 = shalt.err (!%p1128_p4)
}
   0xc   :  { %s1199_s21 = smov 64   ;;  %s1200_s22 = smov 4  }
   0xd   :  { %36 = dma.hbm_to_vmem [thread:$0]  %s1361_s1, 256, %s31_s19, [#allocation6], %s1199_s21, %s1199_s21, %s1200_s22  }
   0xe   :  { %s1201_s25 = smov [#allocation2]  }
   0xf   :  { %s18_s26 = sshll.u32 %s1201_s25, 4  ;;  %s19_s26 = int_to_ptr.vmem [resolvable:$true] %s18_s26 }
  0x10   :  { %s1140_s27 = scalar_lea.vmem %s19_s26, 256  ;;  %p1145_p6 = scmp.lt.s32.totalorder %s19_s26, %s19_s26 }
  0x11   :  { %p1141_p5 = scmp.ne.s32.totalorder %s19_s26, %s1140_s27  ;;  %p1146_p7 = scmp.lt.s32.totalorder %s1140_s27, %s1140_s27 }
  0x13   :  { %p1147_p8 = por %p1146_p7, %p1145_p6 }
  0x15   :  { %p1148_p9 = pnand %p1147_p8, %p1141_p5 }
  0x17   :  { %1151 = shalt.err (!%p1148_p9)
}
  0x18   :  { %s1202_s28 = smov 128   ;;  %s1203_s29 = smov 8  }
  0x19   :  { %24 = dma.hbm_to_vmem [thread:$0]  %s1360_s0, 256, %s19_s26, [#allocation3], %s1202_s28, %s1202_s28, %s1203_s29  }
  0x1a   :  { %s1204_s7 = smov [#allocation7]  }
  0x1b   :  { %s44_s8 = sshll.u32 %s1204_s7, 4  ;;  %s45_s8 = int_to_ptr.vmem [resolvable:$true] %s44_s8 }
  0x1c   :  { %s1160_s1 = scalar_lea.vmem %s45_s8, 2048  ;;  %p1165_p11 = scmp.lt.s32.totalorder %s45_s8, %s45_s8 }
  0x1d   :  { %p1161_p10 = scmp.ne.s32.totalorder %s45_s8, %s1160_s1  ;;  %p1166_p12 = scmp.lt.s32.totalorder %s1160_s1, %s1160_s1 }
  0x1f   :  { %p1167_p13 = por %p1166_p12, %p1165_p11 }
  0x21   :  { %p1168_p0 = pnand %p1167_p13, %p1161_p10 }
  0x23   :  { %1171 = shalt.err (!%p1168_p0)
}
  0x24   :  { %50 = dma.hbm_to_vmem [thread:$0]  %s1363_s3, 2048, %s45_s8, [#allocation6], %s1199_s21, %s1199_s21, %s1200_s22  }
  0x25   :  { %1192 = dma.done.wait [#allocation3], 256  }
  0x26   :  { %1193 = vsyncadd [#allocation3], 4294967040 }
  0x27   :  { %1194 = dma.done.wait [#allocation6], 2304  }
  0x28   :  { %1195 = vsyncadd [#allocation6], 4294964992  ;;  %v1205_v0 = vmov 0.0   ;;  %vm1206_vm0 = vmmov 0   ;;  %v1086_v1 = vld [vmem:[#allocation5 + $0x8] sm:$0xff]   ;;  %v1087_v2 = vld [vmem:[#allocation5] sm:$0xff]  }
  0x29   :  { %979 = vmatprep.subr.bf16.mxu0 %v1205_v0  ;;  %983 = vmatprep.mubr.msk.bf16.mxu0 %vm1206_vm0, %v1205_v0  ;;  %v63_v3 = vld [vmem:[#allocation2] sm:$0xff]  ;;  %v64_v4 = vld [vmem:[#allocation2 + $0x8] sm:$0xff]  ;;  %vm95_vm1 = vcmask 261120   ;;  %s1207_s11 = smov 96   ;;  %vm240_vm2 = vcmask 64512   ;;  %vm270_vm3 = vcmask 1043456  }
  0x2a   :  { %987 = vmatprep.subr.bf16.mxu1 %v1205_v0  ;;  %989 = vmatprep.mubr.msk.bf16.mxu1 %vm1206_vm0, %v1205_v0  ;;  %v943_v5 = vpack.c.bf16 %v64_v4, %v63_v3  ;;  %v909_v6 = vld [vmem:[%s1362_s2] ss:$0 sm:$0xff]  ;;  %v1088_v51 = vld [vmem:[#allocation7 + $0x18] sm:$0xff]   ;;  %v1089_v52 = vld [vmem:[#allocation7 + $0x8] sm:$0xff]   ;;  %vm378_vm4 = vcmask 1041409   ;;  %s1208_s13 = smov [#allocation8]  }
  0x2b   :  { %980 = vmatpush3.bf16.msra.mxu0 %v1086_v1  ;;  %v1090_v53 = vld [vmem:[#allocation7 + $0x10] sm:$0xff]   ;;  %v1091_v54 = vld [vmem:[#allocation7] sm:$0xff]   ;;  %s899_s14 = sshll.u32 %s1208_s13, 4  ;;  %s900_s14 = int_to_ptr.vmem [resolvable:$true] %s899_s14 }
  0x2c   :  { %981 = vmatprep.subr.bf16.mxu0 %v1205_v0  ;;  %s1172_s15 = scalar_lea.vmem %s900_s14, 32  ;;  %p1177_p2 = scmp.lt.s32.totalorder %s900_s14, %s900_s14 }
  0x2d   :  { %p1173_p1 = scmp.ne.s32.totalorder %s900_s14, %s1172_s15  ;;  %p1178_p3 = scmp.lt.s32.totalorder %s1172_s15, %s1172_s15 }
  0x2f   :  { %982 = vmatpush3.bf16.msra.mxu0 %v1087_v2  ;;  %p1179_p4 = por %p1178_p3, %p1177_p2 }
  0x30   :  { %993 = vmatprep.subr.bf16.mxu0 %v1205_v0 }
  0x31   :  { %p1180_p5 = pnand %p1179_p4, %p1173_p1 }
  0x32   :  { %984 = vmatmul.mubr.msk.bf16.vlgmr.msra.gmra.mxu0 %vm95_vm1, %v943_v5  ;;  %v1092_v5 = vld [vmem:[#allocation7 + $0x28] sm:$0xff]  }
  0x33   :  { %995 = vmatprep.mubr.msk.bf16.mxu0 %vm1206_vm0, %v1205_v0 }
  0xf2   :  { %v133_v7 = vpop.f32.mrf.mxu0 }
  0xf3   :  { %v134_v8 = vadd.f32 %v909_v6, %v133_v7 }
  0xf4   :  { %v985_v9 = vpop.f32.mrf.mxu0 }
  0xf5   :  { %v140_v10 = vpack.c.bf16 %v134_v8, %v134_v8 }
  0xf6   :  { %v136_v11 = vpop.f32.mrf.mxu0 }
  0xf7   :  { %v137_v12 = vadd.f32 %v909_v6, %v136_v11  ;;  %143 = vrot.lane.b32.xlu0 %v140_v10, %s1207_s11 }
  0xf8   :  { %v986_v13 = vpop.f32.mrf.mxu0 }
  0xf9   :  { %v141_v14 = vpack.c.bf16 %v137_v12, %v137_v12  ;;  %v1094_v13 = vld [vmem:[#allocation7 + $0x20] sm:$0xff]  }
  0xfb   :  { %192 = vrot.lane.b32.xlu0 %v141_v14, %s1207_s11 }
 0x169   :  { %v144_v15 = vpop.permute.xlu0 %143 }
 0x16a   :  { %v149_v16 = vsel %vm95_vm1, %v144_v15, 0 }
 0x16b   :  { %988 = vmatpush3.bf16.xpose.msra.mxu1 %v149_v16  ;;  %v1095_v16 = vld [vmem:[#allocation7 + $0x30] sm:$0xff]  }
 0x16c   :  { %999 = vmatprep.subr.bf16.mxu1 %v1205_v0 }
 0x16d   :  { %v193_v17 = vpop.permute.xlu0 %192 }
 0x16e   :  { %v198_v18 = vsel %vm95_vm1, %v193_v17, 0 }
 0x16f   :  { %994 = vmatpush3.bf16.xpose.msra.mxu0 %v198_v18 }
 0x170   :  { %1005 = vmatprep.subr.bf16.mxu0 %v1205_v0 }
 0x172   :  { %990 = vmatmul.mubr.msk.bf16.vlgmr.msra.gmra.mxu1 %vm95_vm1, %v140_v10 }
 0x173   :  { %1001 = vmatprep.mubr.msk.bf16.mxu1 %vm1206_vm0, %v1205_v0 }
 0x176   :  { %996 = vmatmul.mubr.msk.bf16.vlgmr.msra.gmra.mxu0 %vm95_vm1, %v141_v14 }
 0x177   :  { %1007 = vmatprep.mubr.msk.bf16.mxu0 %vm1206_vm0, %v1205_v0 }
 0x232   :  { %v185_v19 = vpop.f32.mrf.mxu1 }
 0x233   :  { %v241_v20 = vsel %vm240_vm2, %v185_v19, -inf }
 0x234   :  { %242 = vmax.xlane.f32.xlu1 %v241_v20  ;;  %v991_v21 = vpop.f32.mrf.mxu1 }
 0x236   :  { %v188_v22 = vpop.f32.mrf.mxu1  ;;  %v234_v23 = vpop.f32.mrf.mxu0 }
 0x237   :  { %v244_v24 = vsel %vm240_vm2, %v234_v23, -inf  ;;  %v1097_v22 = vld [vmem:[#allocation7 + $0x58] sm:$0xff]  }
 0x238   :  { %v992_v25 = vpop.f32.mrf.mxu1  ;;  %245 = vmax.xlane.f32.xlu1 %v244_v24  ;;  %v997_v26 = vpop.f32.mrf.mxu0 }
 0x239   :  { %v1098_v25 = vld [vmem:[#allocation7 + $0x40] sm:$0xff]  }
 0x23a   :  { %v237_v27 = vpop.f32.mrf.mxu0 }
 0x23c   :  { %v998_v28 = vpop.f32.mrf.mxu0 }
 0x23d   :  { %v1099_v28 = vld [vmem:[#allocation7 + $0x50] sm:$0xff]  }
 0x249   :  { %265 = vrot.lane.b32.xlu1 %v140_v10, %s1199_s21  ;;  %v1093_v10 = vld [vmem:[#allocation7 + $0x38] sm:$0xff]  }
 0x2bd   :  { %v243_v29 = vpop.xlane.xlu1 %242 }
 0x2be   :  { %v247_v30 = vsub.f32 %v185_v19, %v243_v29  ;;  %v1096_v19 = vld [vmem:[#allocation7 + $0x48] sm:$0xff]  }
 0x2c0   :  { %v249_v31 = vmul.f32 1.442695, %v247_v30 }
 0x2c1   :  { %v246_v32 = vpop.xlane.xlu1 %245 }
 0x2c2   :  { %1104 = vpow2.f32 %v249_v31  ;;  %v248_v33 = vsub.f32 %v234_v23, %v246_v32  ;;  %v1100_v31 = vld [vmem:[#allocation7 + $0x68] sm:$0xff]  }
 0x2c4   :  { %v251_v34 = vmul.f32 1.442695, %v248_v33 }
 0x2c5   :  { %v266_v35 = vpop.permute.xlu1 %265 }
 0x2c6   :  { %1106 = vpow2.f32 %v251_v34  ;;  %v272_v36 = vsel %vm270_vm3, %v266_v35, 0  ;;  %v1101_v34 = vld [vmem:[#allocation7 + $0x78] sm:$0xff]  }
 0x2c7   :  { %1000 = vmatpush3.bf16.msra.mxu1 %v272_v36 }
 0x2c8   :  { %1011 = vmatprep.subr.bf16.mxu1 %v1205_v0 }
 0x2cf   :  { %v1105_v37 = vpop.eup %1104 }
 0x2d0   :  { %v253_v38 = vsel %vm240_vm2, %v1105_v37, 0.0 }
 0x2d1   :  { %254 = vadd.xlane.f32.xlu0 %v253_v38 }
 0x2d3   :  { %v1107_v39 = vpop.eup %1106 }
 0x2d4   :  { %v256_v40 = vsel %vm240_vm2, %v1107_v39, 0.0 }
 0x2d5   :  { %257 = vadd.xlane.f32.xlu1 %v256_v40  ;;  %v1103_v40 = vld [vmem:[#allocation7 + $0x70] sm:$0xff]  }
 0x2e6   :  { %314 = vrot.lane.b32.xlu1 %v141_v14, %s1199_s21 }
 0x35a   :  { %v255_v41 = vpop.xlane.xlu0 %254 }
 0x35b   :  { %1108 = vrcp.f32 %v255_v41 }
 0x35e   :  { %v258_v42 = vpop.xlane.xlu1 %257 }
 0x35f   :  { %1110 = vrcp.f32 %v258_v42 }
 0x362   :  { %v315_v43 = vpop.permute.xlu1 %314 }
 0x363   :  { %v320_v44 = vsel %vm270_vm3, %v315_v43, 0 }
 0x364   :  { %1006 = vmatpush3.bf16.msra.mxu0 %v320_v44 }
 0x365   :  { %1019 = vmatprep.subr.bf16.mxu0 %v1205_v0 }
 0x368   :  { %v1109_v45 = vpop.eup %1108 }
 0x369   :  { %v261_v46 = vmul.f32 %v1109_v45, %v1105_v37  ;;  %v1102_v37 = vld [vmem:[#allocation7 + $0x60] sm:$0xff]  }
 0x36b   :  { %v263_v47 = vpack.c.bf16 %v261_v46, %v261_v46 }
 0x36c   :  { %v1111_v48 = vpop.eup %1110 }
 0x36d   :  { %1002 = vmatmul.mubr.msk.bf16.vlgmr.msra.gmra.mxu1 %vm240_vm2, %v263_v47  ;;  %v262_v49 = vmul.f32 %v1111_v48, %v1107_v39 }
 0x36e   :  { %1015 = vmatprep.mubr.msk.bf16.mxu1 %vm1206_vm0, %v1205_v0  ;;  %1012 = vmatpush3.bf16.msra.mxu1 %v1088_v51 }
 0x36f   :  { %v264_v50 = vpack.c.bf16 %v262_v49, %v262_v49  ;;  %1013 = vmatprep.subr.bf16.mxu1 %v1205_v0 }
 0x371   :  { %1008 = vmatmul.mubr.msk.bf16.vlgmr.msra.gmra.mxu0 %vm240_vm2, %v264_v50 }
 0x372   :  { %1023 = vmatprep.mubr.msk.bf16.mxu0 %vm1206_vm0, %v1205_v0  ;;  %1020 = vmatpush3.bf16.msra.mxu0 %v1089_v52 }
 0x373   :  { %1021 = vmatprep.subr.bf16.mxu0 %v1205_v0  ;;  %1014 = vmatpush3.bf16.msra.mxu1 %v1090_v53 }
 0x374   :  { %1027 = vmatprep.subr.bf16.mxu1 %v1205_v0 }
 0x376   :  { %1022 = vmatpush3.bf16.msra.mxu0 %v1091_v54 }
 0x377   :  { %1035 = vmatprep.subr.bf16.mxu0 %v1205_v0 }
 0x42d   :  { %v308_v55 = vpop.f32.mrf.mxu1 }
 0x42e   :  { %v362_v56 = vpack.c.bf16 %v308_v55, %v308_v55 }
 0x42f   :  { %v1003_v57 = vpop.f32.mrf.mxu1 }
 0x430   :  { %v1296_v58 = vunpack.c.l.b16 %v362_v56 }
 0x431   :  { %v311_v59 = vpop.f32.mrf.mxu1  ;;  %v356_v60 = vpop.f32.mrf.mxu0 }
 0x432   :  { %v363_v61 = vpack.c.bf16 %v356_v60, %v356_v60  ;;  %v377_v2 = vrot.slane %v1296_v58, 1  ;;  %v499_v14 = vrot.slane %v1296_v58, 2  ;;  %v564_v18 = vrot.slane %v1296_v58, 3 }
 0x433   :  { %v1004_v62 = vpop.f32.mrf.mxu1  ;;  %v1009_v63 = vpop.f32.mrf.mxu0  ;;  %v629_v26 = vrot.slane %v1296_v58, 4  ;;  %v694_v30 = vrot.slane %v1296_v58, 5  ;;  %v759_v38 = vrot.slane %v1296_v58, 6  ;;  %v824_v42 = vrot.slane %v1296_v58, 7 }
 0x434   :  { %v1298_v1 = vunpack.c.l.b16 %v363_v61 }
 0x435   :  { %v359_v3 = vpop.f32.mrf.mxu0 }
 0x436   :  { %v379_v4 = vsel %vm378_vm4, %v1298_v1, %v377_v2  ;;  %v436_v6 = vrot.slane %v1298_v1, 7  ;;  %v500_v11 = vrot.slane %v1298_v1, 1  ;;  %v565_v15 = vrot.slane %v1298_v1, 2 }
 0x437   :  { %v1010_v7 = vpop.f32.mrf.mxu0  ;;  %v380_v8 = vpack.c.b16 %v379_v4, %v379_v4  ;;  %v630_v23 = vrot.slane %v1298_v1, 3  ;;  %v695_v27 = vrot.slane %v1298_v1, 4  ;;  %v760_v35 = vrot.slane %v1298_v1, 5 }
 0x438   :  { %v437_v9 = vsel %vm378_vm4, %v436_v6, %v1296_v58  ;;  %v501_v17 = vsel %vm378_vm4, %v500_v11, %v499_v14  ;;  %v566_v20 = vsel %vm378_vm4, %v565_v15, %v564_v18  ;;  %v825_v39 = vrot.slane %v1298_v1, 6  ;;  %v942_v15 = vld [vmem:[%s1364_s4] ss:$0 sm:$0xff] }
 0x439   :  { %1016 = vmatmul.mubr.msk.bf16.vlgmr.msra.gmra.mxu1 %vm95_vm1, %v380_v8  ;;  %v438_v12 = vpack.c.b16 %v437_v9, %v437_v9  ;;  %v502_v21 = vpack.c.b16 %v501_v17, %v501_v17  ;;  %v567_v24 = vpack.c.b16 %v566_v20, %v566_v20  ;;  %v631_v29 = vsel %vm378_vm4, %v630_v23, %v629_v26 }
 0x43a   :  { %1028 = vmatpush3.bf16.msra.mxu1 %v1092_v5  ;;  %1031 = vmatprep.mubr.msk.bf16.mxu1 %vm1206_vm0, %v1205_v0  ;;  %v696_v32 = vsel %vm378_vm4, %v695_v27, %v694_v30  ;;  %v632_v33 = vpack.c.b16 %v631_v29, %v631_v29  ;;  %v761_v41 = vsel %vm378_vm4, %v760_v35, %v759_v38 }
 0x43b   :  { %1024 = vmatmul.mubr.msk.bf16.vlgmr.msra.gmra.mxu0 %vm95_vm1, %v438_v12  ;;  %1029 = vmatprep.subr.bf16.mxu1 %v1205_v0  ;;  %v697_v36 = vpack.c.b16 %v696_v32, %v696_v32  ;;  %v826_v43 = vsel %vm378_vm4, %v825_v39, %v824_v42  ;;  %v762_v44 = vpack.c.b16 %v761_v41, %v761_v41 }
 0x43c   :  { %1036 = vmatpush3.bf16.msra.mxu0 %v1093_v10  ;;  %1039 = vmatprep.mubr.msk.bf16.mxu0 %vm1206_vm0, %v1205_v0  ;;  %v827_v45 = vpack.c.b16 %v826_v43, %v826_v43 }
 0x43d   :  { %1037 = vmatprep.subr.bf16.mxu0 %v1205_v0 }
 0x43e   :  { %1030 = vmatpush3.bf16.msra.mxu1 %v1094_v13 }
 0x43f   :  { %1043 = vmatprep.subr.bf16.mxu1 %v1205_v0 }
 0x440   :  { %1038 = vmatpush3.bf16.msra.mxu0 %v1095_v16 }
 0x441   :  { %1032 = vmatmul.mubr.msk.bf16.vlgmr.msra.gmra.mxu1 %vm95_vm1, %v502_v21  ;;  %1051 = vmatprep.subr.bf16.mxu0 %v1205_v0 }
 0x442   :  { %1044 = vmatpush3.bf16.msra.mxu1 %v1096_v19  ;;  %1047 = vmatprep.mubr.msk.bf16.mxu1 %vm1206_vm0, %v1205_v0 }
 0x443   :  { %1040 = vmatmul.mubr.msk.bf16.vlgmr.msra.gmra.mxu0 %vm95_vm1, %v567_v24  ;;  %1045 = vmatprep.subr.bf16.mxu1 %v1205_v0 }
 0x444   :  { %1052 = vmatpush3.bf16.msra.mxu0 %v1097_v22  ;;  %1055 = vmatprep.mubr.msk.bf16.mxu0 %vm1206_vm0, %v1205_v0 }
 0x445   :  { %1053 = vmatprep.subr.bf16.mxu0 %v1205_v0 }
 0x446   :  { %1046 = vmatpush3.bf16.msra.mxu1 %v1098_v25 }
 0x447   :  { %1059 = vmatprep.subr.bf16.mxu1 %v1205_v0 }
 0x448   :  { %1054 = vmatpush3.bf16.msra.mxu0 %v1099_v28 }
 0x449   :  { %1048 = vmatmul.mubr.msk.bf16.vlgmr.msra.gmra.mxu1 %vm95_vm1, %v632_v33  ;;  %1067 = vmatprep.subr.bf16.mxu0 %v1205_v0 }
 0x44a   :  { %1060 = vmatpush3.bf16.msra.mxu1 %v1100_v31  ;;  %1063 = vmatprep.mubr.msk.bf16.mxu1 %vm1206_vm0, %v1205_v0 }
 0x44b   :  { %1056 = vmatmul.mubr.msk.bf16.vlgmr.msra.gmra.mxu0 %vm95_vm1, %v697_v36  ;;  %1061 = vmatprep.subr.bf16.mxu1 %v1205_v0 }
 0x44c   :  { %1068 = vmatpush3.bf16.msra.mxu0 %v1101_v34  ;;  %1071 = vmatprep.mubr.msk.bf16.mxu0 %vm1206_vm0, %v1205_v0 }
 0x44d   :  { %1069 = vmatprep.subr.bf16.mxu0 %v1205_v0 }
 0x44e   :  { %1062 = vmatpush3.bf16.msra.mxu1 %v1102_v37 }
 0x450   :  { %1070 = vmatpush3.bf16.msra.mxu0 %v1103_v40 }
 0x451   :  { %1064 = vmatmul.mubr.msk.bf16.vlgmr.msra.gmra.mxu1 %vm95_vm1, %v762_v44 }
 0x453   :  { %1072 = vmatmul.mubr.msk.bf16.vlgmr.msra.gmra.mxu0 %vm95_vm1, %v827_v45 }
 0x4f9   :  { %v430_v46 = vpop.f32.mrf.mxu1 }
 0x4fb   :  { %v1017_v47 = vpop.f32.mrf.mxu1  ;;  %v488_v48 = vpop.f32.mrf.mxu0 }
 0x4fc   :  { %v489_v56 = vadd.f32 %v488_v48, %v430_v46 }
 0x4fd   :  { %v433_v49 = vpop.f32.mrf.mxu1  ;;  %v1025_v50 = vpop.f32.mrf.mxu0 }
 0x4ff   :  { %v1018_v51 = vpop.f32.mrf.mxu1  ;;  %v491_v52 = vpop.f32.mrf.mxu0 }
 0x501   :  { %v1026_v53 = vpop.f32.mrf.mxu0  ;;  %v552_v54 = vpop.f32.mrf.mxu1 }
 0x502   :  { %v558_v59 = vadd.f32 %v552_v54, %v489_v56 }
 0x503   :  { %v1033_v0 = vpop.f32.mrf.mxu1  ;;  %v617_v55 = vpop.f32.mrf.mxu0 }
 0x504   :  { %v623_v1 = vadd.f32 %v617_v55, %v558_v59 }
 0x505   :  { %v555_v57 = vpop.f32.mrf.mxu1  ;;  %v1041_v58 = vpop.f32.mrf.mxu0 }
 0x507   :  { %v1034_v60 = vpop.f32.mrf.mxu1  ;;  %v620_v61 = vpop.f32.mrf.mxu0 }
 0x509   :  { %v1042_v62 = vpop.f32.mrf.mxu0  ;;  %v682_v63 = vpop.f32.mrf.mxu1 }
 0x50a   :  { %v688_v4 = vadd.f32 %v682_v63, %v623_v1 }
 0x50b   :  { %v1049_v2 = vpop.f32.mrf.mxu1  ;;  %v747_v3 = vpop.f32.mrf.mxu0 }
 0x50c   :  { %v753_v9 = vadd.f32 %v747_v3, %v688_v4 }
 0x50d   :  { %v685_v5 = vpop.f32.mrf.mxu1  ;;  %v1057_v6 = vpop.f32.mrf.mxu0 }
 0x50f   :  { %v1050_v7 = vpop.f32.mrf.mxu1  ;;  %v750_v8 = vpop.f32.mrf.mxu0 }
 0x511   :  { %v1058_v10 = vpop.f32.mrf.mxu0  ;;  %v812_v11 = vpop.f32.mrf.mxu1 }
 0x512   :  { %v818_v12 = vadd.f32 %v812_v11, %v753_v9 }
 0x513   :  { %v1065_v13 = vpop.f32.mrf.mxu1  ;;  %v877_v14 = vpop.f32.mrf.mxu0 }
 0x514   :  { %v883_v16 = vadd.f32 %v877_v14, %v818_v12 }
 0x515   :  { %v815_v17 = vpop.f32.mrf.mxu1  ;;  %v1073_v18 = vpop.f32.mrf.mxu0 }
 0x516   :  { %v891_v19 = vadd.f32 %v942_v15, %v883_v16 }
 0x517   :  { %v1066_v20 = vpop.f32.mrf.mxu1  ;;  %v880_v21 = vpop.f32.mrf.mxu0 }
 0x518   :  { %892 = vst [vmem:[#allocation8] sm:$0x3] %v891_v19 }
 0x519   :  { %v1074_v22 = vpop.f32.mrf.mxu0 }
 0x51a   :  { %1183 = shalt.err (!%p1180_p5)
}
 0x51b   :  { %902 = dma.vmem_to_hbm [thread:$0]  %s900_s14, 32, %s1365_s5, [#allocation4]  }
 0x51c   :  { %1196 = dma.done.wait [#allocation4], 32  }
 0x51d   :  { %1197 = vsyncadd [#allocation4], 4294967264 }
 0x51e   :  { %906 = vsyncpa [#allocation3], 1 }
 0x51f   :  { %907 = vsyncpa [#allocation6], 1 }
 0x520   :  { %908 = vsyncpa [#allocation4], 1 }

// kernel: tpu_custom_call.1
= control target key start
LH: loop header
LB: loop body
LE: loop exit
PB: predicated region body
PF: predicated region fallthrough
CT: control target
= control target key end

     0   :  { %10 = vsyncpa [#allocation3], 0  ;;  %s1360_s0 = inlined_call_operand.hbm [shape: f32[2,8,32], index: 0, kind: input, shape index: {}]   ;;  %s1361_s1 = inlined_call_operand.hbm [shape: bf16[32,96], index: 1, kind: input, shape index: {}]   ;;  %s1362_s2 = inlined_call_operand.vmem [shape: f32[1,96], index: 2, kind: input, shape index: {}]   ;;  %s1363_s3 = inlined_call_operand.hbm [shape: bf16[8,32,128], index: 3, kind: input, shape index: {}]   ;;  %s1364_s4 = inlined_call_operand.vmem [shape: f32[1,128], index: 4, kind: input, shape index: {}]   ;;  %s1365_s5 = inlined_call_operand.hbm [shape: f32[2,128], index: 5, kind: output, shape index: {}]  }
   0x1   :  { %11 = vsyncpa [#allocation6], 0 }
   0x2   :  { %12 = vsyncpa [#allocation4], 0  ;;  %s1198_s18 = smov [#allocation5]  }
   0x3   :  { %s30_s19 = sshll.u32 %s1198_s18, 4  ;;  %s31_s19 = int_to_ptr.vmem [resolvable:$true] %s30_s19 }
   0x4   :  { %s1120_s20 = scalar_lea.vmem %s31_s19, 256  ;;  %p1125_p1 = scmp.lt.s32.totalorder %s31_s19, %s31_s19 }
   0x5   :  { %p1121_p0 = scmp.ne.s32.totalorder %s31_s19, %s1120_s20  ;;  %p1126_p2 = scmp.lt.s32.totalorder %s1120_s20, %s1120_s20 }
   0x7   :  { %p1127_p3 = por %p1126_p2, %p1125_p1 }
   0x9   :  { %p1128_p4 = pnand %p1127_p3, %p1121_p0 }
   0xb   :  { %1131 = shalt.err (!%p1128_p4)
}
   0xc   :  { %s1199_s21 = smov 64   ;;  %s1200_s22 = smov 4  }
   0xd   :  { %36 = dma.hbm_to_vmem [thread:$0]  %s1361_s1, 256, %s31_s19, [#allocation6], %s1199_s21, %s1199_s21, %s1200_s22  }
   0xe   :  { %s1201_s25 = smov [#allocation2]  }
   0xf   :  { %s18_s26 = sshll.u32 %s1201_s25, 4  ;;  %s19_s26 = int_to_ptr.vmem [resolvable:$true] %s18_s26 }
  0x10   :  { %s1140_s27 = scalar_lea.vmem %s19_s26, 256  ;;  %p1145_p6 = scmp.lt.s32.totalorder %s19_s26, %s19_s26 }
  0x11   :  { %p1141_p5 = scmp.ne.s32.totalorder %s19_s26, %s1140_s27  ;;  %p1146_p7 = scmp.lt.s32.totalorder %s1140_s27, %s1140_s27 }
  0x13   :  { %p1147_p8 = por %p1146_p7, %p1145_p6 }
  0x15   :  { %p1148_p9 = pnand %p1147_p8, %p1141_p5 }
  0x17   :  { %1151 = shalt.err (!%p1148_p9)
}
  0x18   :  { %s1202_s28 = smov 128   ;;  %s1203_s29 = smov 8  }
  0x19   :  { %24 = dma.hbm_to_vmem [thread:$0]  %s1360_s0, 256, %s19_s26, [#allocation3], %s1202_s28, %s1202_s28, %s1203_s29  }
  0x1a   :  { %s1204_s7 = smov [#allocation7]  }
  0x1b   :  { %s44_s8 = sshll.u32 %s1204_s7, 4  ;;  %s45_s8 = int_to_ptr.vmem [resolvable:$true] %s44_s8 }
  0x1c   :  { %s1160_s1 = scalar_lea.vmem %s45_s8, 2048  ;;  %p1165_p11 = scmp.lt.s32.totalorder %s45_s8, %s45_s8 }
  0x1d   :  { %p1161_p10 = scmp.ne.s32.totalorder %s45_s8, %s1160_s1  ;;  %p1166_p12 = scmp.lt.s32.totalorder %s1160_s1, %s1160_s1 }
  0x1f   :  { %p1167_p13 = por %p1166_p12, %p1165_p11 }
  0x21   :  { %p1168_p0 = pnand %p1167_p13, %p1161_p10 }
  0x23   :  { %1171 = shalt.err (!%p1168_p0)
}
  0x24   :  { %50 = dma.hbm_to_vmem [thread:$0]  %s1363_s3, 2048, %s45_s8, [#allocation6], %s1199_s21, %s1199_s21, %s1200_s22  }
  0x25   :  { %1192 = dma.done.wait [#allocation3], 256  }
  0x26   :  { %1193 = vsyncadd [#allocation3], 4294967040 }
  0x27   :  { %1194 = dma.done.wait [#allocation6], 2304  }
  0x28   :  { %1195 = vsyncadd [#allocation6], 4294964992  ;;  %v1205_v0 = vmov 0.0   ;;  %vm1206_vm0 = vmmov 0   ;;  %v1086_v1 = vld [vmem:[#allocation5 + $0x8] sm:$0xff]   ;;  %v1087_v2 = vld [vmem:[#allocation5] sm:$0xff]  }
  0x29   :  { %979 = vmatprep.subr.bf16.mxu0 %v1205_v0  ;;  %983 = vmatprep.mubr.msk.bf16.mxu0 %vm1206_vm0, %v1205_v0  ;;  %v63_v3 = vld [vmem:[#allocation2] sm:$0xff]  ;;  %v64_v4 = vld [vmem:[#allocation2 + $0x8] sm:$0xff]  ;;  %vm95_vm1 = vcmask 261120   ;;  %s1207_s11 = smov 96   ;;  %vm240_vm2 = vcmask 64512   ;;  %vm270_vm3 = vcmask 1043456  }
  0x2a   :  { %987 = vmatprep.subr.bf16.mxu1 %v1205_v0  ;;  %989 = vmatprep.mubr.msk.bf16.mxu1 %vm1206_vm0, %v1205_v0  ;;  %v943_v5 = vpack.c.bf16 %v64_v4, %v63_v3  ;;  %v909_v6 = vld [vmem:[%s1362_s2] ss:$0 sm:$0xff]  ;;  %v1088_v51 = vld [vmem:[#allocation7 + $0x18] sm:$0xff]   ;;  %v1089_v52 = vld [vmem:[#allocation7 + $0x8] sm:$0xff]   ;;  %vm378_vm4 = vcmask 1041409   ;;  %s1208_s13 = smov [#allocation8]  }
  0x2b   :  { %980 = vmatpush3.bf16.msra.mxu0 %v1086_v1  ;;  %v1090_v53 = vld [vmem:[#allocation7 + $0x10] sm:$0xff]   ;;  %v1091_v54 = vld [vmem:[#allocation7] sm:$0xff]   ;;  %s899_s14 = sshll.u32 %s1208_s13, 4  ;;  %s900_s14 = int_to_ptr.vmem [resolvable:$true] %s899_s14 }
  0x2c   :  { %981 = vmatprep.subr.bf16.mxu0 %v1205_v0  ;;  %s1172_s15 = scalar_lea.vmem %s900_s14, 32  ;;  %p1177_p2 = scmp.lt.s32.totalorder %s900_s14, %s900_s14 }
  0x2d   :  { %p1173_p1 = scmp.ne.s32.totalorder %s900_s14, %s1172_s15  ;;  %p1178_p3 = scmp.lt.s32.totalorder %s1172_s15, %s1172_s15 }
  0x2f   :  { %982 = vmatpush3.bf16.msra.mxu0 %v1087_v2  ;;  %p1179_p4 = por %p1178_p3, %p1177_p2 }
  0x30   :  { %993 = vmatprep.subr.bf16.mxu0 %v1205_v0 }
  0x31   :  { %p1180_p5 = pnand %p1179_p4, %p1173_p1 }
  0x32   :  { %984 = vmatmul.mubr.msk.bf16.vlgmr.msra.gmra.mxu0 %vm95_vm1, %v943_v5  ;;  %v1092_v5 = vld [vmem:[#allocation7 + $0x28] sm:$0xff]  }
  0x33   :  { %995 = vmatprep.mubr.msk.bf16.mxu0 %vm1206_vm0, %v1205_v0 }
  0xf2   :  { %v133_v7 = vpop.f32.mrf.mxu0 }
  0xf3   :  { %v134_v8 = vadd.f32 %v909_v6, %v133_v7 }
  0xf4   :  { %v985_v9 = vpop.f32.mrf.mxu0 }
  0xf5   :  { %v140_v10 = vpack.c.bf16 %v134_v8, %v134_v8 }
  0xf6   :  { %v136_v11 = vpop.f32.mrf.mxu0 }
  0xf7   :  { %v137_v12 = vadd.f32 %v909_v6, %v136_v11  ;;  %143 = vrot.lane.b32.xlu0 %v140_v10, %s1207_s11 }
  0xf8   :  { %v986_v13 = vpop.f32.mrf.mxu0 }
  0xf9   :  { %v141_v14 = vpack.c.bf16 %v137_v12, %v137_v12  ;;  %v1094_v13 = vld [vmem:[#allocation7 + $0x20] sm:$0xff]  }
  0xfb   :  { %192 = vrot.lane.b32.xlu0 %v141_v14, %s1207_s11 }
 0x169   :  { %v144_v15 = vpop.permute.xlu0 %143 }
 0x16a   :  { %v149_v16 = vsel %vm95_vm1, %v144_v15, 0 }
 0x16b   :  { %988 = vmatpush3.bf16.xpose.msra.mxu1 %v149_v16  ;;  %v1095_v16 = vld [vmem:[#allocation7 + $0x30] sm:$0xff]  }
 0x16c   :  { %999 = vmatprep.subr.bf16.mxu1 %v1205_v0 }
 0x16d   :  { %v193_v17 = vpop.permute.xlu0 %192 }
 0x16e   :  { %v198_v18 = vsel %vm95_vm1, %v193_v17, 0 }
 0x16f   :  { %994 = vmatpush3.bf16.xpose.msra.mxu0 %v198_v18 }
 0x170   :  { %1005 = vmatprep.subr.bf16.mxu0 %v1205_v0 }
 0x172   :  { %990 = vmatmul.mubr.msk.bf16.vlgmr.msra.gmra.mxu1 %vm95_vm1, %v140_v10 }
 0x173   :  { %1001 = vmatprep.mubr.msk.bf16.mxu1 %vm1206_vm0, %v1205_v0 }
 0x176   :  { %996 = vmatmul.mubr.msk.bf16.vlgmr.msra.gmra.mxu0 %vm95_vm1, %v141_v14 }
 0x177   :  { %1007 = vmatprep.mubr.msk.bf16.mxu0 %vm1206_vm0, %v1205_v0 }
 0x232   :  { %v185_v19 = vpop.f32.mrf.mxu1 }
 0x233   :  { %v241_v20 = vsel %vm240_vm2, %v185_v19, -inf }
 0x234   :  { %242 = vmax.xlane.f32.xlu1 %v241_v20  ;;  %v991_v21 = vpop.f32.mrf.mxu1 }
 0x236   :  { %v188_v22 = vpop.f32.mrf.mxu1  ;;  %v234_v23 = vpop.f32.mrf.mxu0 }
 0x237   :  { %v244_v24 = vsel %vm240_vm2, %v234_v23, -inf  ;;  %v1097_v22 = vld [vmem:[#allocation7 + $0x58] sm:$0xff]  }
 0x238   :  { %v992_v25 = vpop.f32.mrf.mxu1  ;;  %245 = vmax.xlane.f32.xlu1 %v244_v24  ;;  %v997_v26 = vpop.f32.mrf.mxu0 }
 0x239   :  { %v1098_v25 = vld [vmem:[#allocation7 + $0x40] sm:$0xff]  }
 0x23a   :  { %v237_v27 = vpop.f32.mrf.mxu0 }
 0x23c   :  { %v998_v28 = vpop.f32.mrf.mxu0 }
 0x23d   :  { %v1099_v28 = vld [vmem:[#allocation7 + $0x50] sm:$0xff]  }
 0x249   :  { %265 = vrot.lane.b32.xlu1 %v140_v10, %s1199_s21  ;;  %v1093_v10 = vld [vmem:[#allocation7 + $0x38] sm:$0xff]  }
 0x2bd   :  { %v243_v29 = vpop.xlane.xlu1 %242 }
 0x2be   :  { %v247_v30 = vsub.f32 %v185_v19, %v243_v29  ;;  %v1096_v19 = vld [vmem:[#allocation7 + $0x48] sm:$0xff]  }
 0x2c0   :  { %v249_v31 = vmul.f32 1.442695, %v247_v30 }
 0x2c1   :  { %v246_v32 = vpop.xlane.xlu1 %245 }
 0x2c2   :  { %1104 = vpow2.f32 %v249_v31  ;;  %v248_v33 = vsub.f32 %v234_v23, %v246_v32  ;;  %v1100_v31 = vld [vmem:[#allocation7 + $0x68] sm:$0xff]  }
 0x2c4   :  { %v251_v34 = vmul.f32 1.442695, %v248_v33 }
 0x2c5   :  { %v266_v35 = vpop.permute.xlu1 %265 }
 0x2c6   :  { %1106 = vpow2.f32 %v251_v34  ;;  %v272_v36 = vsel %vm270_vm3, %v266_v35, 0  ;;  %v1101_v34 = vld [vmem:[#allocation7 + $0x78] sm:$0xff]  }
 0x2c7   :  { %1000 = vmatpush3.bf16.msra.mxu1 %v272_v36 }
 0x2c8   :  { %1011 = vmatprep.subr.bf16.mxu1 %v1205_v0 }
 0x2cf   :  { %v1105_v37 = vpop.eup %1104 }
 0x2d0   :  { %v253_v38 = vsel %vm240_vm2, %v1105_v37, 0.0 }
 0x2d1   :  { %254 = vadd.xlane.f32.xlu0 %v253_v38 }
 0x2d3   :  { %v1107_v39 = vpop.eup %1106 }
 0x2d4   :  { %v256_v40 = vsel %vm240_vm2, %v1107_v39, 0.0 }
 0x2d5   :  { %257 = vadd.xlane.f32.xlu1 %v256_v40  ;;  %v1103_v40 = vld [vmem:[#allocation7 + $0x70] sm:$0xff]  }
 0x2e6   :  { %314 = vrot.lane.b32.xlu1 %v141_v14, %s1199_s21 }
 0x35a   :  { %v255_v41 = vpop.xlane.xlu0 %254 }
 0x35b   :  { %1108 = vrcp.f32 %v255_v41 }
 0x35e   :  { %v258_v42 = vpop.xlane.xlu1 %257 }
 0x35f   :  { %1110 = vrcp.f32 %v258_v42 }
 0x362   :  { %v315_v43 = vpop.permute.xlu1 %314 }
 0x363   :  { %v320_v44 = vsel %vm270_vm3, %v315_v43, 0 }
 0x364   :  { %1006 = vmatpush3.bf16.msra.mxu0 %v320_v44 }
 0x365   :  { %1019 = vmatprep.subr.bf16.mxu0 %v1205_v0 }
 0x368   :  { %v1109_v45 = vpop.eup %1108 }
 0x369   :  { %v261_v46 = vmul.f32 %v1109_v45, %v1105_v37  ;;  %v1102_v37 = vld [vmem:[#allocation7 + $0x60] sm:$0xff]  }
 0x36b   :  { %v263_v47 = vpack.c.bf16 %v261_v46, %v261_v46 }
 0x36c   :  { %v1111_v48 = vpop.eup %1110 }
 0x36d   :  { %1002 = vmatmul.mubr.msk.bf16.vlgmr.msra.gmra.mxu1 %vm240_vm2, %v263_v47  ;;  %v262_v49 = vmul.f32 %v1111_v48, %v1107_v39 }
 0x36e   :  { %1015 = vmatprep.mubr.msk.bf16.mxu1 %vm1206_vm0, %v1205_v0  ;;  %1012 = vmatpush3.bf16.msra.mxu1 %v1088_v51 }
 0x36f   :  { %v264_v50 = vpack.c.bf16 %v262_v49, %v262_v49  ;;  %1013 = vmatprep.subr.bf16.mxu1 %v1205_v0 }
 0x371   :  { %1008 = vmatmul.mubr.msk.bf16.vlgmr.msra.gmra.mxu0 %vm240_vm2, %v264_v50 }
 0x372   :  { %1023 = vmatprep.mubr.msk.bf16.mxu0 %vm1206_vm0, %v1205_v0  ;;  %1020 = vmatpush3.bf16.msra.mxu0 %v1089_v52 }
 0x373   :  { %1021 = vmatprep.subr.bf16.mxu0 %v1205_v0  ;;  %1014 = vmatpush3.bf16.msra.mxu1 %v1090_v53 }
 0x374   :  { %1027 = vmatprep.subr.bf16.mxu1 %v1205_v0 }
 0x376   :  { %1022 = vmatpush3.bf16.msra.mxu0 %v1091_v54 }
 0x377   :  { %1035 = vmatprep.subr.bf16.mxu0 %v1205_v0 }
 0x42d   :  { %v308_v55 = vpop.f32.mrf.mxu1 }
 0x42e   :  { %v362_v56 = vpack.c.bf16 %v308_v55, %v308_v55 }
 0x42f   :  { %v1003_v57 = vpop.f32.mrf.mxu1 }
 0x430   :  { %v1296_v58 = vunpack.c.l.b16 %v362_v56 }
 0x431   :  { %v311_v59 = vpop.f32.mrf.mxu1  ;;  %v356_v60 = vpop.f32.mrf.mxu0 }
 0x432   :  { %v363_v61 = vpack.c.bf16 %v356_v60, %v356_v60  ;;  %v377_v2 = vrot.slane %v1296_v58, 1  ;;  %v499_v14 = vrot.slane %v1296_v58, 2  ;;  %v564_v18 = vrot.slane %v1296_v58, 3 }
 0x433   :  { %v1004_v62 = vpop.f32.mrf.mxu1  ;;  %v1009_v63 = vpop.f32.mrf.mxu0  ;;  %v629_v26 = vrot.slane %v1296_v58, 4  ;;  %v694_v30 = vrot.slane %v1296_v58, 5  ;;  %v759_v38 = vrot.slane %v1296_v58, 6  ;;  %v824_v42 = vrot.slane %v1296_v58, 7 }
 0x434   :  { %v1298_v1 = vunpack.c.l.b16 %v363_v61 }
 0x435   :  { %v359_v3 = vpop.f32.mrf.mxu0 }
 0x436   :  { %v379_v4 = vsel %vm378_vm4, %v1298_v1, %v377_v2  ;;  %v436_v6 = vrot.slane %v1298_v1, 7  ;;  %v500_v11 = vrot.slane %v1298_v1, 1  ;;  %v565_v15 = vrot.slane %v1298_v1, 2 }
 0x437   :  { %v1010_v7 = vpop.f32.mrf.mxu0  ;;  %v380_v8 = vpack.c.b16 %v379_v4, %v379_v4  ;;  %v630_v23 = vrot.slane %v1298_v1, 3  ;;  %v695_v27 = vrot.slane %v1298_v1, 4  ;;  %v760_v35 = vrot.slane %v1298_v1, 5 }
 0x438   :  { %v437_v9 = vsel %vm378_vm4, %v436_v6, %v1296_v58  ;;  %v501_v17 = vsel %vm378_vm4, %v500_v11, %v499_v14  ;;  %v566_v20 = vsel %vm378_vm4, %v565_v15, %v564_v18  ;;  %v825_v39 = vrot.slane %v1298_v1, 6  ;;  %v942_v15 = vld [vmem:[%s1364_s4] ss:$0 sm:$0xff] }
 0x439   :  { %1016 = vmatmul.mubr.msk.bf16.vlgmr.msra.gmra.mxu1 %vm95_vm1, %v380_v8  ;;  %v438_v12 = vpack.c.b16 %v437_v9, %v437_v9  ;;  %v502_v21 = vpack.c.b16 %v501_v17, %v501_v17  ;;  %v567_v24 = vpack.c.b16 %v566_v20, %v566_v20  ;;  %v631_v29 = vsel %vm378_vm4, %v630_v23, %v629_v26 }
 0x43a   :  { %1028 = vmatpush3.bf16.msra.mxu1 %v1092_v5  ;;  %1031 = vmatprep.mubr.msk.bf16.mxu1 %vm1206_vm0, %v1205_v0  ;;  %v696_v32 = vsel %vm378_vm4, %v695_v27, %v694_v30  ;;  %v632_v33 = vpack.c.b16 %v631_v29, %v631_v29  ;;  %v761_v41 = vsel %vm378_vm4, %v760_v35, %v759_v38 }
 0x43b   :  { %1024 = vmatmul.mubr.msk.bf16.vlgmr.msra.gmra.mxu0 %vm95_vm1, %v438_v12  ;;  %1029 = vmatprep.subr.bf16.mxu1 %v1205_v0  ;;  %v697_v36 = vpack.c.b16 %v696_v32, %v696_v32  ;;  %v826_v43 = vsel %vm378_vm4, %v825_v39, %v824_v42  ;;  %v762_v44 = vpack.c.b16 %v761_v41, %v761_v41 }
 0x43c   :  { %1036 = vmatpush3.bf16.msra.mxu0 %v1093_v10  ;;  %1039 = vmatprep.mubr.msk.bf16.mxu0 %vm1206_vm0, %v1205_v0  ;;  %v827_v45 = vpack.c.b16 %v826_v43, %v826_v43 }
 0x43d   :  { %1037 = vmatprep.subr.bf16.mxu0 %v1205_v0 }
 0x43e   :  { %1030 = vmatpush3.bf16.msra.mxu1 %v1094_v13 }
 0x43f   :  { %1043 = vmatprep.subr.bf16.mxu1 %v1205_v0 }
 0x440   :  { %1038 = vmatpush3.bf16.msra.mxu0 %v1095_v16 }
 0x441   :  { %1032 = vmatmul.mubr.msk.bf16.vlgmr.msra.gmra.mxu1 %vm95_vm1, %v502_v21  ;;  %1051 = vmatprep.subr.bf16.mxu0 %v1205_v0 }
 0x442   :  { %1044 = vmatpush3.bf16.msra.mxu1 %v1096_v19  ;;  %1047 = vmatprep.mubr.msk.bf16.mxu1 %vm1206_vm0, %v1205_v0 }
 0x443   :  { %1040 = vmatmul.mubr.msk.bf16.vlgmr.msra.gmra.mxu0 %vm95_vm1, %v567_v24  ;;  %1045 = vmatprep.subr.bf16.mxu1 %v1205_v0 }
 0x444   :  { %1052 = vmatpush3.bf16.msra.mxu0 %v1097_v22  ;;  %1055 = vmatprep.mubr.msk.bf16.mxu0 %vm1206_vm0, %v1205_v0 }
 0x445   :  { %1053 = vmatprep.subr.bf16.mxu0 %v1205_v0 }
 0x446   :  { %1046 = vmatpush3.bf16.msra.mxu1 %v1098_v25 }
 0x447   :  { %1059 = vmatprep.subr.bf16.mxu1 %v1205_v0 }
 0x448   :  { %1054 = vmatpush3.bf16.msra.mxu0 %v1099_v28 }
 0x449   :  { %1048 = vmatmul.mubr.msk.bf16.vlgmr.msra.gmra.mxu1 %vm95_vm1, %v632_v33  ;;  %1067 = vmatprep.subr.bf16.mxu0 %v1205_v0 }
 0x44a   :  { %1060 = vmatpush3.bf16.msra.mxu1 %v1100_v31  ;;  %1063 = vmatprep.mubr.msk.bf16.mxu1 %vm1206_vm0, %v1205_v0 }
 0x44b   :  { %1056 = vmatmul.mubr.msk.bf16.vlgmr.msra.gmra.mxu0 %vm95_vm1, %v697_v36  ;;  %1061 = vmatprep.subr.bf16.mxu1 %v1205_v0 }
 0x44c   :  { %1068 = vmatpush3.bf16.msra.mxu0 %v1101_v34  ;;  %1071 = vmatprep.mubr.msk.bf16.mxu0 %vm1206_vm0, %v1205_v0 }
 0x44d   :  { %1069 = vmatprep.subr.bf16.mxu0 %v1205_v0 }
 0x44e   :  { %1062 = vmatpush3.bf16.msra.mxu1 %v1102_v37 }
 0x450   :  { %1070 = vmatpush3.bf16.msra.mxu0 %v1103_v40 }
 0x451   :  { %1064 = vmatmul.mubr.msk.bf16.vlgmr.msra.gmra.mxu1 %vm95_vm1, %v762_v44 }
 0x453   :  { %1072 = vmatmul.mubr.msk.bf16.vlgmr.msra.gmra.mxu0 %vm95_vm1, %v827_v45 }
 0x4f9   :  { %v430_v46 = vpop.f32.mrf.mxu1 }
 0x4fb   :  { %v1017_v47 = vpop.f32.mrf.mxu1  ;;  %v488_v48 = vpop.f32.mrf.mxu0 }
 0x4fc   :  { %v489_v56 = vadd.f32 %v488_v48, %v430_v46 }
 0x4fd   :  { %v433_v49 = vpop.f32.mrf.mxu1  ;;  %v1025_v50 = vpop.f32.mrf.mxu0 }
 0x4ff   :  { %v1018_v51 = vpop.f32.mrf.mxu1  ;;  %v491_v52 = vpop.f32.mrf.mxu0 }
 0x501   :  { %v1026_v53 = vpop.f32.mrf.mxu0  ;;  %v552_v54 = vpop.f32.mrf.mxu1 }
 0x502   :  { %v558_v59 = vadd.f32 %v552_v54, %v489_v56 }
 0x503   :  { %v1033_v0 = vpop.f32.mrf.mxu1  ;;  %v617_v55 = vpop.f32.mrf.mxu0 }
 0x504   :  { %v623_v1 = vadd.f32 %v617_v55, %v558_v59 }
 0x505   :  { %v555_v57 = vpop.f32.mrf.mxu1  ;;  %v1041_v58 = vpop.f32.mrf.mxu0 }
 0x507   :  { %v1034_v60 = vpop.f32.mrf.mxu1  ;;  %v620_v61 = vpop.f32.mrf.mxu0 }
 0x509   :  { %v1042_v62 = vpop.f32.mrf.mxu0  ;;  %v682_v63 = vpop.f32.mrf.mxu1 }
 0x50a   :  { %v688_v4 = vadd.f32 %v682_v63, %v623_v1 }
 0x50b   :  { %v1049_v2 = vpop.f32.mrf.mxu1  ;;  %v747_v3 = vpop.f32.mrf.mxu0 }
 0x50c   :  { %v753_v9 = vadd.f32 %v747_v3, %v688_v4 }
 0x50d   :  { %v685_v5 = vpop.f32.mrf.mxu1  ;;  %v1057_v6 = vpop.f32.mrf.mxu0 }
 0x50f   :  { %v1050_v7 = vpop.f32.mrf.mxu1  ;;  %v750_v8 = vpop.f32.mrf.mxu0 }
 0x511   :  { %v1058_v10 = vpop.f32.mrf.mxu0  ;;  %v812_v11 = vpop.f32.mrf.mxu1 }
 0x512   :  { %v818_v12 = vadd.f32 %v812_v11, %v753_v9 }
 0x513   :  { %v1065_v13 = vpop.f32.mrf.mxu1  ;;  %v877_v14 = vpop.f32.mrf.mxu0 }
 0x514   :  { %v883_v16 = vadd.f32 %v877_v14, %v818_v12 }
 0x515   :  { %v815_v17 = vpop.f32.mrf.mxu1  ;;  %v1073_v18 = vpop.f32.mrf.mxu0 }
 0x516   :  { %v891_v19 = vadd.f32 %v942_v15, %v883_v16 }
 0x517   :  { %v1066_v20 = vpop.f32.mrf.mxu1  ;;  %v880_v21 = vpop.f32.mrf.mxu0 }
 0x518   :  { %892 = vst [vmem:[#allocation8] sm:$0x3] %v891_v19 }
 0x519   :  { %v1074_v22 = vpop.f32.mrf.mxu0 }
 0x51a   :  { %1183 = shalt.err (!%p1180_p5)
}
 0x51b   :  { %902 = dma.vmem_to_hbm [thread:$0]  %s900_s14, 32, %s1365_s5, [#allocation4]  }
 0x51c   :  { %1196 = dma.done.wait [#allocation4], 32  }
 0x51d   :  { %1197 = vsyncadd [#allocation4], 4294967264 }
 0x51e   :  { %906 = vsyncpa [#allocation3], 1 }
 0x51f   :  { %907 = vsyncpa [#allocation6], 1 }
 0x520   :  { %908 = vsyncpa [#allocation4], 1 }

</bundles_post_ra>
